<compile_context>
chip_gen: v7x
topology: tpu7x:2x2x1
jax: 0.10.0
libtpu: 0.0.40
codegen_flags: <defaults>
</compile_context>

<pallas_src>
import functools
import numpy as np
import jax
import jax.numpy as jnp
from jax.experimental import pallas as pl
from jax.experimental.pallas import tpu as pltpu

F32 = jnp.float32
BF16 = jnp.bfloat16
LANE = 128


# ----------------------------- small helpers -----------------------------

def _round_up(a, b):
    return (a + b - 1) // b * b


def _pad_rows(n):
    n = max(int(n), 1)
    if n >= 256:
        return _round_up(n, 256)
    return _round_up(n, 16)


def _pick_tile_m(rows):
    # biggest divisor tile <= 512 (v7x note: for very large rows this still
    # yields >= 2 grid steps, keeping both TensorCores busy under "parallel")
    for t in (512, 256, 128, 64, 32, 16, 8):
        if t <= rows and rows % t == 0:
            return t
    return rows


def _pad2(x, rows, cols, dtype=None):
    x = jnp.asarray(x)
    if dtype is not None:
        x = x.astype(dtype)
    r, c = x.shape
    return jnp.pad(x, ((0, rows - r), (0, cols - c)))


def _bytes(shape, dtype):
    return int(np.prod(shape)) * int(np.dtype(dtype).itemsize)


def _vmem_budget(blocks, scratch_bytes=0):
    """Per-call VMEM limit: 2x (double buffer) per block + scratch + headroom."""
    total = sum(2 * _bytes(s, d) for s, d in blocks) + int(scratch_bytes)
    total += 4 * 1024 * 1024                       # compiler-internal headroom
    return int(min(max(total, 8 * 1024 * 1024), 96 * 1024 * 1024))


def _cparams(*sem, vmem):
    return pltpu.CompilerParams(dimension_semantics=sem,
                                vmem_limit_bytes=int(vmem))


# ----------------------------- Pallas kernels -----------------------------

# (1) XW = x @ W_gcn   (x already bf16 on the host; bf16 MXU, f32 accumulation)
def _matmul_kernel(x_ref, w_ref, o_ref):
    x = x_ref[...]
    if x.dtype != BF16:
        x = x.astype(BF16)
    o_ref[...] = jnp.dot(x, w_ref[...],
                         preferred_element_type=jnp.float32).astype(o_ref.dtype)


def pallas_matmul(x_pad, w_pad, out_dtype=BF16):
    rows, kp = x_pad.shape
    nout = w_pad.shape[1]
    tm = _pick_tile_m(rows)
    blocks = [((tm, kp), x_pad.dtype), ((kp, nout), w_pad.dtype),
              ((tm, nout), out_dtype)]
    return pl.pallas_call(
        _matmul_kernel,
        out_shape=jax.ShapeDtypeStruct((rows, nout), out_dtype),
        grid=(rows // tm,),
        in_specs=[pl.BlockSpec((tm, kp), lambda i: (i, 0)),
                  pl.BlockSpec((kp, nout), lambda i: (0, 0))],
        out_specs=pl.BlockSpec((tm, nout), lambda i: (i, 0)),
        compiler_params=_cparams("parallel", vmem=_vmem_budget(blocks)),
    )(x_pad, w_pad)


# (2) node_emb = ReLU(ReLU(A_norm @ XW + b_gcn) @ W_attr + b_attr) + temp_enc
#     XW is VMEM-resident (constant index map) and sliced in-kernel per K step.
def _gcn_temporal_kernel(a_ref, xw_ref, bg_ref, wa_ref, ba_ref, te_ref,
                         o_ref, acc_ref, *, tk):
    k = pl.program_id(1)

    @pl.when(k == 0)
    def _():
        acc_ref[...] = jnp.zeros_like(acc_ref)

    start = pl.multiple_of(k * tk, tk)
    acc_ref[...] += jnp.dot(a_ref[...], xw_ref[pl.ds(start, tk), :],
                            preferred_element_type=jnp.float32)

    @pl.when(k == pl.num_programs(1) - 1)
    def _():
        g = jnp.maximum(acc_ref[...] + bg_ref[...], 0.0)          # GCN + ReLU
        attr = jnp.dot(g.astype(BF16), wa_ref[...],
                       preferred_element_type=jnp.float32) + ba_ref[...]
        attr = jnp.maximum(attr, 0.0)                             # attr emb + ReLU
        o_ref[...] = (attr + te_ref[...]).astype(o_ref.dtype)     # + temporal enc


def gcn_temporal(a_pad, xw_pad, b_gcn, w_attr, b_attr, temp_enc):
    rows, kcols = a_pad.shape
    ep = xw_pad.shape[1]
    hp = w_attr.shape[1]
    tm = _pick_tile_m(rows)
    tk = min(1024, kcols)
    if kcols % tk:
        tk = LANE
    blocks = [((tm, tk), a_pad.dtype), ((kcols, ep), xw_pad.dtype),
              ((1, ep), F32), ((ep, hp), w_attr.dtype), ((1, hp), F32),
              ((1, hp), F32), ((tm, hp), F32)]
    scratch = tm * ep * 4
    return pl.pallas_call(
        functools.partial(_gcn_temporal_kernel, tk=tk),
        out_shape=jax.ShapeDtypeStruct((rows, hp), F32),
        grid=(rows // tm, kcols // tk),
        in_specs=[pl.BlockSpec((tm, tk), lambda i, k: (i, k)),
                  pl.BlockSpec((kcols, ep), lambda i, k: (0, 0)),   # resident XW
                  pl.BlockSpec((1, ep), lambda i, k: (0, 0)),
                  pl.BlockSpec((ep, hp), lambda i, k: (0, 0)),
                  pl.BlockSpec((1, hp), lambda i, k: (0, 0)),
                  pl.BlockSpec((1, hp), lambda i, k: (0, 0))],
        out_specs=pl.BlockSpec((tm, hp), lambda i, k: (i, 0)),
        scratch_shapes=[pltpu.VMEM((tm, ep), jnp.float32)],
        compiler_params=_cparams("parallel", "arbitrary",
                                 vmem=_vmem_budget(blocks, scratch)),
    )(a_pad, xw_pad, b_gcn, w_attr, b_attr, temp_enc)


# (3) fused_x = S @ node_emb  (dense aggregation operator, replaces the XLA
#     gather/segment_sum section) and qkv = fused_x @ W_qkv + b_qkv, fused.
def _agg_qkv_kernel(s_ref, ne_ref, wq_ref, bq_ref, fused_ref, qkv_ref):
    fused = jnp.dot(s_ref[...], ne_ref[...].astype(BF16),
                    preferred_element_type=jnp.float32)
    fused_ref[...] = fused
    qkv_ref[...] = jnp.dot(fused.astype(BF16), wq_ref[...],
                           preferred_element_type=jnp.float32) + bq_ref[...]


def pallas_agg_qkv(s_mat, node_emb, qkv_w, qkv_b):
    nvp, nrows = s_mat.shape
    hp = node_emb.shape[1]
    qkvp = qkv_w.shape[1]
    tm = _pick_tile_m(nvp)
    blocks = [((tm, nrows), s_mat.dtype), ((nrows, hp), node_emb.dtype),
              ((hp, qkvp), qkv_w.dtype), ((1, qkvp), F32),
              ((tm, hp), F32), ((tm, qkvp), F32)]
    return pl.pallas_call(
        _agg_qkv_kernel,
        out_shape=(jax.ShapeDtypeStruct((nvp, hp), F32),
                   jax.ShapeDtypeStruct((nvp, qkvp), F32)),
        grid=(nvp // tm,),
        in_specs=[pl.BlockSpec((tm, nrows), lambda i: (i, 0)),
                  pl.BlockSpec((nrows, hp), lambda i: (0, 0)),     # resident
                  pl.BlockSpec((hp, qkvp), lambda i: (0, 0)),
                  pl.BlockSpec((1, qkvp), lambda i: (0, 0))],
        out_specs=(pl.BlockSpec((tm, hp), lambda i: (i, 0)),
                   pl.BlockSpec((tm, qkvp), lambda i: (i, 0))),
        compiler_params=_cparams("parallel", vmem=_vmem_budget(blocks)),
    )(s_mat, node_emb, qkv_w, qkv_b)


def _masked_ln(v, gamma, beta, mask, h_real, eps):
    # LayerNorm over the *real* (unpadded) feature lanes only.
    vm = v * mask
    mean = jnp.sum(vm, axis=-1, keepdims=True) * (1.0 / h_real)
    c = (v - mean) * mask
    var = jnp.sum(c * c, axis=-1, keepdims=True) * (1.0 / h_real)
    return c * jax.lax.rsqrt(var + eps) * gamma + beta


# (4) out = LN2(LN1(x+attn) + FFN(LN1(x+attn)));  pred = MLP(out)
#     FFN hidden and transformer output never leave VMEM before the MLP.
def _tail_mlp_kernel(x_ref, attn_ref, vec_ref, w1_ref, b1_ref, w2_ref,
                     wm1_ref, bm1_ref, wm2_ref, bm2_ref, o_ref, p_ref,
                     *, h_real, eps):
    hp = x_ref.shape[-1]
    mask = (jax.lax.broadcasted_iota(jnp.int32, (1, hp), 1) < h_real).astype(F32)
    vec = vec_ref[...]
    g1, b1ln, g2, b2ln, bf2 = vec[0:1], vec[1:2], vec[2:3], vec[3:4], vec[4:5]

    x1 = _masked_ln(x_ref[...] + attn_ref[...], g1, b1ln, mask, h_real, eps)
    h = jnp.dot(x1.astype(BF16), w1_ref[...],
                preferred_element_type=jnp.float32) + b1_ref[...]
    h = jnp.maximum(h, 0.0)
    f = jnp.dot(h.astype(BF16), w2_ref[...],
                preferred_element_type=jnp.float32) + bf2
    out = _masked_ln(x1 + f, g2, b2ln, mask, h_real, eps)
    o_ref[...] = out.astype(o_ref.dtype)

    m = jnp.dot(out.astype(BF16), wm1_ref[...],
                preferred_element_type=jnp.float32) + bm1_ref[...]
    m = jnp.maximum(m, 0.0)                       # dropout: identity (eval mode)
    p_ref[...] = (jnp.dot(m.astype(BF16), wm2_ref[...],
                          preferred_element_type=jnp.float32)
                  + bm2_ref[...]).astype(p_ref.dtype)


def pallas_tail_mlp(x_pad, attn_pad, prep, *, h_real, eps=1e-5):
    rows, hp = x_pad.shape
    fp = prep["ffn1_w"].shape[1]
    mp = prep["fc1_w"].shape[1]
    op = prep["fc2_w"].shape[1]
    tm = _pick_tile_m(rows)
    blocks = [((tm, hp), F32), ((tm, hp), F32), ((8, hp), F32),
              ((hp, fp), BF16), ((1, fp), F32), ((fp, hp), BF16),
              ((hp, mp), BF16), ((1, mp), F32), ((mp, op), BF16), ((1, op), F32),
              ((tm, hp), F32), ((tm, op), F32)]
    return pl.pallas_call(
        functools.partial(_tail_mlp_kernel, h_real=int(h_real), eps=eps),
        out_shape=(jax.ShapeDtypeStruct((rows, hp), F32),
                   jax.ShapeDtypeStruct((rows, op), F32)),
        grid=(rows // tm,),
        in_specs=[pl.BlockSpec((tm, hp), lambda i: (i, 0)),
                  pl.BlockSpec((tm, hp), lambda i: (i, 0)),
                  pl.BlockSpec((8, hp), lambda i: (0, 0)),
                  pl.BlockSpec((hp, fp), lambda i: (0, 0)),
                  pl.BlockSpec((1, fp), lambda i: (0, 0)),
                  pl.BlockSpec((fp, hp), lambda i: (0, 0)),
                  pl.BlockSpec((hp, mp), lambda i: (0, 0)),
                  pl.BlockSpec((1, mp), lambda i: (0, 0)),
                  pl.BlockSpec((mp, op), lambda i: (0, 0)),
                  pl.BlockSpec((1, op), lambda i: (0, 0))],
        out_specs=(pl.BlockSpec((tm, hp), lambda i: (i, 0)),
                   pl.BlockSpec((tm, op), lambda i: (i, 0))),
        compiler_params=_cparams("parallel", vmem=_vmem_budget(blocks)),
    )(x_pad, attn_pad, prep["ln_ffn2_vecs"], prep["ffn1_w"], prep["ffn1_b"],
      prep["ffn2_w"], prep["fc1_w"], prep["fc1_b"], prep["fc2_w"], prep["fc2_b"])


# standalone MLP (only for the "no valid indices" branch of the reference)
def _mlp_kernel(x_ref, w1_ref, b1_ref, w2_ref, b2_ref, o_ref):
    h = jnp.dot(x_ref[...].astype(BF16), w1_ref[...],
                preferred_element_type=jnp.float32) + b1_ref[...]
    h = jnp.maximum(h, 0.0)
    o_ref[...] = (jnp.dot(h.astype(BF16), w2_ref[...],
                          preferred_element_type=jnp.float32)
                  + b2_ref[...]).astype(o_ref.dtype)


def pallas_mlp(x_pad, prep):
    rows, hp = x_pad.shape
    mp = prep["fc1_w"].shape[1]
    op = prep["fc2_w"].shape[1]
    tm = _pick_tile_m(rows)
    blocks = [((tm, hp), F32), ((hp, mp), BF16), ((1, mp), F32),
              ((mp, op), BF16), ((1, op), F32), ((tm, op), F32)]
    return pl.pallas_call(
        _mlp_kernel,
        out_shape=jax.ShapeDtypeStruct((rows, op), F32),
        grid=(rows // tm,),
        in_specs=[pl.BlockSpec((tm, hp), lambda i: (i, 0)),
                  pl.BlockSpec((hp, mp), lambda i: (0, 0)),
                  pl.BlockSpec((1, mp), lambda i: (0, 0)),
                  pl.BlockSpec((mp, op), lambda i: (0, 0)),
                  pl.BlockSpec((1, op), lambda i: (0, 0))],
        out_specs=pl.BlockSpec((tm, op), lambda i: (i, 0)),
        compiler_params=_cparams("parallel", vmem=_vmem_budget(blocks)),
    )(x_pad, prep["fc1_w"], prep["fc1_b"], prep["fc2_w"], prep["fc2_b"])


# ----------------------------- parameter init -----------------------------

def _init_linear(key, in_dim, out_dim, w_scale=0.1, b_scale=0.01):
    kw, kb = jax.random.split(key)
    # stored like nn.Linear: weight [out, in], bias [out]
    return {"w": jax.random.normal(kw, (out_dim, in_dim), F32) * w_scale,
            "b": jax.random.normal(kb, (out_dim,), F32) * b_scale}


def init_params(key, input_dim, embedding_size, hidden_size,
                num_temporal_bases, mlp_hidden_size):
    ks = jax.random.split(key, 8)
    return {
        "gcn":  _init_linear(ks[0], input_dim, embedding_size),
        "attr": _init_linear(ks[1], embedding_size, hidden_size),
        "temp": _init_linear(ks[2], 2 * num_temporal_bases, hidden_size),
        "qkv":  _init_linear(ks[3], hidden_size, 3 * hidden_size),
        "ffn1": _init_linear(ks[4], hidden_size, 4 * hidden_size),
        "ffn2": _init_linear(ks[5], 4 * hidden_size, hidden_size),
        "norm1": {"g": jnp.ones(hidden_size, F32), "b": jnp.zeros(hidden_size, F32)},
        "norm2": {"g": jnp.ones(hidden_size, F32), "b": jnp.zeros(hidden_size, F32)},
        "fc1":  _init_linear(ks[6], hidden_size, mlp_hidden_size),
        "fc2":  _init_linear(ks[7], mlp_hidden_size, 1),
    }


def prepare_params(raw, dims):
    """Pre-transpose to [in,out], pad to lane width, cast weights to bf16 once."""
    H = dims["hidden"]
    dp, ep, hp, fp, mp, op, qkvp = (dims["dp"], dims["ep"], dims["hp"],
                                    dims["fp"], dims["mp"], dims["op"],
                                    dims["qkvp"])

    def w_io(lin, ip, opad):
        return _pad2(jnp.asarray(lin["w"]).T, ip, opad, BF16)

    def b_row(vec, opad):
        return _pad2(jnp.asarray(vec).reshape(1, -1), 1, opad, F32)

    # LN1/LN2 gamma+beta and ffn2 bias packed into one (8, hp) operand.
    vecs = jnp.zeros((8, hp), F32)
    vecs = vecs.at[0, :H].set(raw["norm1"]["g"])
    vecs = vecs.at[1, :H].set(raw["norm1"]["b"])
    vecs = vecs.at[2, :H].set(raw["norm2"]["g"])
    vecs = vecs.at[3, :H].set(raw["norm2"]["b"])
    vecs = vecs.at[4, :H].set(raw["ffn2"]["b"])

    return {
        "gcn_w": w_io(raw["gcn"], dp, ep),
        "gcn_b": b_row(raw["gcn"]["b"], ep),
        "attr_w": w_io(raw["attr"], ep, hp),
        "attr_b": b_row(raw["attr"]["b"], hp),
        # Q|K|V packed contiguously (3*H real lanes), padded once to qkvp.
        "qkv_w": _pad2(jnp.asarray(raw["qkv"]["w"]).T, hp, qkvp, BF16),
        "qkv_b": b_row(raw["qkv"]["b"], qkvp),
        "ffn1_w": w_io(raw["ffn1"], hp, fp),
        "ffn1_b": b_row(raw["ffn1"]["b"], fp),
        "ffn2_w": w_io(raw["ffn2"], fp, hp),
        "ln_ffn2_vecs": vecs,
        "fc1_w": w_io(raw["fc1"], hp, mp),
        "fc1_b": b_row(raw["fc1"]["b"], mp),
        "fc2_w": w_io(raw["fc2"], mp, op),
        "fc2_b": b_row(raw["fc2"]["b"], op),
    }


# ----------------------------- host preprocessing -----------------------------

def gcn_norm_dense(edge_src, edge_tgt, num_nodes):
    """Dense D^{-1/2}(A+I)D^{-1/2}, aggregation at the target (PyG GCNConv)."""
    loops = np.arange(num_nodes)
    src = np.concatenate([edge_src, loops])
    tgt = np.concatenate([edge_tgt, loops])
    deg = np.zeros(num_nodes, np.float64)
    np.add.at(deg, tgt, 1.0)
    dinv = 1.0 / np.sqrt(np.maximum(deg, 1e-12))
    a = np.zeros((num_nodes, num_nodes), np.float32)
    np.add.at(a, (tgt, src), (dinv[src] * dinv[tgt]).astype(np.float32))
    return a


def preprocess_graph(edge_src, edge_tgt, edge_weight, num_nodes, index_obtains):
    """Structure-only preprocessing, done once (hoisted out of the forward)."""
    # node-row padding floored at 128 so the S @ node_emb contraction dim is
    # always lane-aligned; padded node rows are multiplied by zero S columns.
    rows_pad = max(_pad_rows(num_nodes), LANE)
    tk_pre = 512 if num_nodes > 512 else _round_up(num_nodes, LANE)
    cols_pad = _round_up(num_nodes, tk_pre)

    a = gcn_norm_dense(edge_src, edge_tgt, num_nodes)
    a_pad = np.zeros((rows_pad, cols_pad), np.float32)
    a_pad[:num_nodes, :num_nodes] = a
    # TODO(synk): store a_pad in fp8 on v7x (values in [0,1]) to halve DMA bytes.

    # per-source neighbor lists (same semantics as the reference `neighbors`)
    nbrs = {}
    for s, t, w in zip(edge_src, edge_tgt, edge_weight):
        nbrs.setdefault(int(s), []).append((int(t), float(w)))

    valid = [int(v) for v in index_obtains if int(v) in nbrs]
    pos = {v: i for i, v in enumerate(valid)}
    n_valid = len(valid)
    nv_pad = _pad_rows(max(n_valid, 1))

    # dense aggregation operator S so that   fused_x = S @ node_emb
    #   combined = mean(w * emb[nbr]) + emb[vi] - mean(emb[nbr])
    #            = emb[vi] + sum_nbr ((w - 1)/cnt) * emb[nbr]
    s_mat = np.zeros((nv_pad, rows_pad), np.float32)
    for i, vi in enumerate(valid):
        lst = nbrs[vi]
        cnt = float(len(lst))
        s_mat[i, vi] += 1.0
        for t, w in lst:
            s_mat[i, t] += (w - 1.0) / cnt

    # subgraph edges for the sparse attention (src and tgt both valid)
    src_m, tgt_m = [], []
    for s, t in zip(edge_src, edge_tgt):
        s, t = int(s), int(t)
        if s in pos and t in pos:
            src_m.append(pos[s]); tgt_m.append(pos[t])

    n_obt = len(index_obtains)
    graph = {
        "a_pad": jnp.asarray(a_pad, dtype=BF16),
        "s_mat": jnp.asarray(s_mat, dtype=BF16),
        "src_m": jnp.asarray(src_m if src_m else [0], jnp.int32),
        "tgt_m": jnp.asarray(tgt_m if tgt_m else [0], jnp.int32),
        "obtain_idx": jnp.asarray(list(index_obtains) if n_obt else [0], jnp.int32),
    }
    cfg = {
        "num_nodes": num_nodes, "rows_pad": rows_pad, "cols_pad": cols_pad,
        "n_valid": n_valid, "nv_pad": nv_pad,
        "n_sub_edges": len(src_m),
        "n_obt": n_obt, "obt_pad": _pad_rows(max(n_obt, 1)),
        "valid": valid,
    }
    return graph, cfg


def temporal_encoding(raw, timestamp, num_temporal_bases, hp):
    # Reproduces the reference exponents exactly (incl. operator precedence).
    b = np.zeros((num_temporal_bases, 2), np.float32)
    for i in range(num_temporal_bases):
        b[i, 0] = np.sin(timestamp / 10000.0 ** (2 * i / num_temporal_bases))
        b[i, 1] = np.cos(timestamp / 10000.0 ** (2 * i + 1.0 / num_temporal_bases))
    bases = jnp.asarray(b.reshape(1, -1))
    te = jax.nn.relu(bases @ jnp.asarray(raw["temp"]["w"]).T
                     + jnp.asarray(raw["temp"]["b"]))
    return _pad2(te, 1, hp, F32)


# ----------------------------- model forward -----------------------------

def make_forward(prep, graph, cfg, dims, num_heads):
    H, hp = dims["hidden"], dims["hp"]
    nv, nv_pad = cfg["n_valid"], cfg["nv_pad"]
    hd = H // num_heads
    has_valid = nv > 0
    has_edges = cfg["n_sub_edges"] > 0

    def fwd(x_pad, temp_enc_pad):
        # ---- GCNConv: XW (bf16), then fused A_norm matmul + attr + temporal ----
        xw = pallas_matmul(x_pad, prep["gcn_w"], out_dtype=BF16)
        node_emb = gcn_temporal(graph["a_pad"], xw, prep["gcn_b"],
                                prep["attr_w"], prep["attr_b"], temp_enc_pad)

        if not has_valid:
            n_obt = cfg["n_obt"]
            sel = node_emb[graph["obtain_idx"]]                    # [n_obt, hp]
            sel_pad = jnp.pad(sel, ((0, cfg["obt_pad"] - n_obt), (0, 0)))
            pred = pallas_mlp(sel_pad, prep)[:n_obt, :1]
            return pred, sel[:, :H][None]

        # ---- neighbor aggregation (dense S operator) + QKV projection, fused ----
        fused_x_pad, qkv = pallas_agg_qkv(graph["s_mat"], node_emb,
                                          prep["qkv_w"], prep["qkv_b"])

        # ---- sparse graph transformer: edge-wise attention ----
        # TODO(synk): data-dependent per-edge gathers / segment_sums stay in
        # jitted XLA (a PrefetchScalarGridSpec gather kernel is the Pallas route).
        if has_edges:
            q = qkv[:nv, 0:H].reshape(nv, num_heads, hd)
            k = qkv[:nv, H:2 * H].reshape(nv, num_heads, hd)
            v = qkv[:nv, 2 * H:3 * H].reshape(nv, num_heads, hd)
            s_m, t_m = graph["src_m"], graph["tgt_m"]
            scores = jnp.sum(q[s_m] * k[t_m], axis=-1) / (hd ** 0.5)   # [E, heads]
            sm = jax.nn.softmax(scores, axis=0)   # GLOBAL softmax over edges (as in reference)
            node_mass = jax.ops.segment_sum(sm, s_m, num_segments=nv)
            attn_w = node_mass[s_m]
            weighted = attn_w[..., None] * v[t_m]
            out_attn = jax.ops.segment_sum(weighted, s_m,
                                           num_segments=nv).reshape(nv, H)
            attn_pad = jnp.pad(out_attn, ((0, nv_pad - nv), (0, hp - H)))
        else:
            attn_pad = jnp.zeros((nv_pad, hp), F32)

        # ---- LN1 -> FFN -> LN2 and prediction MLP, one fused kernel ----
        out_pad, pred_pad = pallas_tail_mlp(fused_x_pad, attn_pad, prep, h_real=H)

        fused = out_pad[:nv, :H][None]                             # [1, nv, H]
        pred = pred_pad[:nv, :1]                                   # [nv, 1]
        return pred, fused

    return jax.jit(fwd)


# ----------------------------- demo / main -----------------------------

if __name__ == "__main__":
    N = 16
    input_dim = 8
    embedding_size = 16
    hidden_size = 32           # divisible by num_heads=4 -> head_dim=8
    num_temporal_bases = 4
    num_relations = 3          # unused by the forward pass (matches reference)
    mlp_hidden_size = 16
    num_heads = 4

    key = jax.random.PRNGKey(0)
    k_x, k_p = jax.random.split(key)
    x = jax.random.normal(k_x, (N, input_dim), F32)

    # deterministic undirected graph: ring + chord (both directions)
    src_list, tgt_list, w_list = [], [], []
    for i in range(N):
        for step in (1, 3):
            j = (i + step) % N
            for s, t in ((i, j), (j, i)):
                src_list.append(s)
                tgt_list.append(t)
                w_list.append(0.5 + 0.25 * ((s + 2 * t) % 3))
    edge_src = np.asarray(src_list, np.int32)
    edge_tgt = np.asarray(tgt_list, np.int32)
    edge_weight = np.asarray(w_list, np.float32)

    raw = init_params(k_p, input_dim, embedding_size, hidden_size,
                      num_temporal_bases, mlp_hidden_size)

    dims = dict(hidden=hidden_size,
                dp=_round_up(input_dim, LANE),
                ep=_round_up(embedding_size, LANE),
                hp=_round_up(hidden_size, LANE),
                fp=_round_up(4 * hidden_size, LANE),
                mp=_round_up(mlp_hidden_size, LANE),
                qkvp=_round_up(3 * hidden_size, LANE),
                op=LANE)
    prep = prepare_params(raw, dims)

    index_obtains = list(range(N))
    graph, cfg = preprocess_graph(edge_src, edge_tgt, edge_weight, N, index_obtains)

    timestamp = 5.0
    temp_enc = temporal_encoding(raw, timestamp, num_temporal_bases, dims["hp"])

    # node features padded: rows to the adjacency K dim, cols to 128 lanes; bf16
    x_pad = _pad2(x, cfg["cols_pad"], dims["dp"], BF16)

    fwd = make_forward(prep, graph, cfg, dims, num_heads)
    prediction, fused = fwd(x_pad, temp_enc)
    jax.block_until_ready(prediction)
    jax.block_until_ready(fused)

    valid = cfg["valid"] if cfg["n_valid"] > 0 else index_obtains
    assert prediction.shape == (len(valid), 1)
    assert fused.shape == (1, len(valid), hidden_size)
    assert bool(jnp.all(jnp.isfinite(prediction)))
    assert bool(jnp.all(jnp.isfinite(fused)))
    print("KERNEL_OK")
</pallas_src>

<mosaic_0001>
module attributes {stable_mosaic.version = 11 : i64} {
  func.func @_gcn_temporal_kernel(%arg0: i32, %arg1: i32, %arg2: memref<128x128xbf16, #tpu.memory_space<vmem>>, %arg3: memref<128x128xbf16, #tpu.memory_space<vmem>>, %arg4: memref<1x128xf32, #tpu.memory_space<vmem>>, %arg5: memref<128x128xbf16, #tpu.memory_space<vmem>>, %arg6: memref<1x128xf32, #tpu.memory_space<vmem>>, %arg7: memref<1x128xf32, #tpu.memory_space<vmem>>, %arg8: memref<128x128xf32, #tpu.memory_space<vmem>>, %arg9: memref<128x128xf32, #tpu.memory_space<vmem>>) attributes {dimension_semantics = [#tpu.dimension_semantics<parallel>, #tpu.dimension_semantics<arbitrary>], iteration_bounds = array<i64: 1, 1>, scalar_prefetch = 0 : i64, scratch_operands = 1 : i64, tpu.core_type = #tpu.core_type<tc>, window_params = [{transform_indices = @transform_0, window_bounds = array<i64: 128, 128>}, {pipeline_mode = #tpu.pipeline_mode<synchronous>, transform_indices = @transform_1, window_bounds = array<i64: 128, 128>}, {pipeline_mode = #tpu.pipeline_mode<synchronous>, transform_indices = @transform_2, window_bounds = array<i64: 1, 128>}, {pipeline_mode = #tpu.pipeline_mode<synchronous>, transform_indices = @transform_3, window_bounds = array<i64: 128, 128>}, {pipeline_mode = #tpu.pipeline_mode<synchronous>, transform_indices = @transform_4, window_bounds = array<i64: 1, 128>}, {pipeline_mode = #tpu.pipeline_mode<synchronous>, transform_indices = @transform_5, window_bounds = array<i64: 1, 128>}, {transform_indices = @transform_6, window_bounds = array<i64: 128, 128>}]} {
    %c0_i32 = arith.constant 0 : i32
    %0 = arith.cmpi eq, %arg1, %c0_i32 : i32
    %1 = arith.extui %0 : i1 to i32
    %c0_i32_0 = arith.constant 0 : i32
    %2 = arith.cmpi ne, %1, %c0_i32_0 : i32
    scf.if %2 {
      %cst_9 = arith.constant 0.000000e+00 : f32
      %15 = vector.broadcast %cst_9 : f32 to vector<128x128xf32>
      %c0_10 = arith.constant 0 : index
      %c0_11 = arith.constant 0 : index
      %16 = vector.load %arg9[%c0_10, %c0_11] : memref<128x128xf32, #tpu.memory_space<vmem>>, vector<128x128xf32>
      tpu.vector_store %arg9[%c0_10, %c0_11], %15 {strides = array<i32>} : memref<128x128xf32, #tpu.memory_space<vmem>>, vector<128x128xf32>,
    } else {
    }
    %c128_i32 = arith.constant 128 : i32
    %3 = arith.muli %arg1, %c128_i32 : i32
    %4 = tpu.assume_multiple %3, 128 : i32
    %c0 = arith.constant 0 : index
    %c0_1 = arith.constant 0 : index
    %5 = vector.load %arg9[%c0, %c0_1] : memref<128x128xf32, #tpu.memory_space<vmem>>, vector<128x128xf32>
    %c0_2 = arith.constant 0 : index
    %c0_3 = arith.constant 0 : index
    %6 = vector.load %arg2[%c0_2, %c0_3] : memref<128x128xbf16, #tpu.memory_space<vmem>>, vector<128x128xbf16>
    %7 = arith.index_cast %4 : i32 to index
    %c0_4 = arith.constant 0 : index
    %8 = vector.load %arg3[%7, %c0_4] : memref<128x128xbf16, #tpu.memory_space<vmem>>, vector<128x128xbf16>
    %cst = arith.constant dense<0.000000e+00> : vector<128x128xf32>
    %9 = tpu.matmul %6, %8, %cst {dimension_numbers = #tpu.dot_dimension_numbers<[1], [0], [0], [1], [0, 0, 1, 1], [], []>} : vector<128x128xbf16>, vector<128x128xbf16>, vector<128x128xf32> -> vector<128x128xf32>
    %10 = arith.addf %5, %9 : vector<128x128xf32>
    %c0_5 = arith.constant 0 : index
    %c0_6 = arith.constant 0 : index
    %11 = vector.load %arg9[%c0_5, %c0_6] : memref<128x128xf32, #tpu.memory_space<vmem>>, vector<128x128xf32>
    tpu.vector_store %arg9[%c0_5, %c0_6], %10 {strides = array<i32>} : memref<128x128xf32, #tpu.memory_space<vmem>>, vector<128x128xf32>,
    %c0_i32_7 = arith.constant 0 : i32
    %12 = arith.cmpi eq, %arg1, %c0_i32_7 : i32
    %13 = arith.extui %12 : i1 to i32
    %c0_i32_8 = arith.constant 0 : i32
    %14 = arith.cmpi ne, %13, %c0_i32_8 : i32
    scf.if %14 {
      %c0_9 = arith.constant 0 : index
      %c0_10 = arith.constant 0 : index
      %15 = vector.load %arg9[%c0_9, %c0_10] : memref<128x128xf32, #tpu.memory_space<vmem>>, vector<128x128xf32>
      %c0_11 = arith.constant 0 : index
      %c0_12 = arith.constant 0 : index
      %16 = vector.load %arg4[%c0_11, %c0_12] : memref<1x128xf32, #tpu.memory_space<vmem>>, vector<1x128xf32>
      %17 = vector.broadcast %16 : vector<1x128xf32> to vector<128x128xf32>
      %18 = arith.addf %15, %17 : vector<128x128xf32>
      %cst_13 = arith.constant 0.000000e+00 : f32
      %19 = vector.broadcast %cst_13 : f32 to vector<128x128xf32>
      %20 = arith.maximumf %18, %19 : vector<128x128xf32>
      %21 = arith.truncf %20 : vector<128x128xf32> to vector<128x128xbf16>
      %c0_14 = arith.constant 0 : index
      %c0_15 = arith.constant 0 : index
      %22 = vector.load %arg5[%c0_14, %c0_15] : memref<128x128xbf16, #tpu.memory_space<vmem>>, vector<128x128xbf16>
      %cst_16 = arith.constant dense<0.000000e+00> : vector<128x128xf32>
      %23 = tpu.matmul %21, %22, %cst_16 {dimension_numbers = #tpu.dot_dimension_numbers<[1], [0], [0], [1], [0, 0, 1, 1], [], []>} : vector<128x128xbf16>, vector<128x128xbf16>, vector<128x128xf32> -> vector<128x128xf32>
      %c0_17 = arith.constant 0 : index
      %c0_18 = arith.constant 0 : index
      %24 = vector.load %arg6[%c0_17, %c0_18] : memref<1x128xf32, #tpu.memory_space<vmem>>, vector<1x128xf32>
      %25 = vector.broadcast %24 : vector<1x128xf32> to vector<128x128xf32>
      %26 = arith.addf %23, %25 : vector<128x128xf32>
      %cst_19 = arith.constant 0.000000e+00 : f32
      %27 = vector.broadcast %cst_19 : f32 to vector<128x128xf32>
      %28 = arith.maximumf %26, %27 : vector<128x128xf32>
      %c0_20 = arith.constant 0 : index
      %c0_21 = arith.constant 0 : index
      %29 = vector.load %arg7[%c0_20, %c0_21] : memref<1x128xf32, #tpu.memory_space<vmem>>, vector<1x128xf32>
      %30 = vector.broadcast %29 : vector<1x128xf32> to vector<128x128xf32>
      %31 = arith.addf %28, %30 : vector<128x128xf32>
      %c0_22 = arith.constant 0 : index
      %c0_23 = arith.constant 0 : index
      %32 = vector.load %arg8[%c0_22, %c0_23] : memref<128x128xf32, #tpu.memory_space<vmem>>, vector<128x128xf32>
      tpu.vector_store %arg8[%c0_22, %c0_23], %31 {strides = array<i32>} : memref<128x128xf32, #tpu.memory_space<vmem>>, vector<128x128xf32>,
    } else {
    }
    return
  }
  func.func @transform_0(%arg0: i32, %arg1: i32) -> (i32, i32) {
    %c0_i32 = arith.constant 0 : i32
    return %arg0, %arg1 : i32, i32
  }
  func.func @transform_1(%arg0: i32, %arg1: i32) -> (i32, i32) {
    %c0_i32 = arith.constant 0 : i32
    %c0_i32_0 = arith.constant 0 : i32
    %c0_i32_1 = arith.constant 0 : i32
    return %c0_i32, %c0_i32_0 : i32, i32
  }
  func.func @transform_2(%arg0: i32, %arg1: i32) -> (i32, i32) {
    %c0_i32 = arith.constant 0 : i32
    %c0_i32_0 = arith.constant 0 : i32
    %c0_i32_1 = arith.constant 0 : i32
    return %c0_i32, %c0_i32_0 : i32, i32
  }
  func.func @transform_3(%arg0: i32, %arg1: i32) -> (i32, i32) {
    %c0_i32 = arith.constant 0 : i32
    %c0_i32_0 = arith.constant 0 : i32
    %c0_i32_1 = arith.constant 0 : i32
    return %c0_i32, %c0_i32_0 : i32, i32
  }
  func.func @transform_4(%arg0: i32, %arg1: i32) -> (i32, i32) {
    %c0_i32 = arith.constant 0 : i32
    %c0_i32_0 = arith.constant 0 : i32
    %c0_i32_1 = arith.constant 0 : i32
    return %c0_i32, %c0_i32_0 : i32, i32
  }
  func.func @transform_5(%arg0: i32, %arg1: i32) -> (i32, i32) {
    %c0_i32 = arith.constant 0 : i32
    %c0_i32_0 = arith.constant 0 : i32
    %c0_i32_1 = arith.constant 0 : i32
    return %c0_i32, %c0_i32_0 : i32, i32
  }
  func.func @transform_6(%arg0: i32, %arg1: i32) -> (i32, i32) {
    %c0_i32 = arith.constant 0 : i32
    %c0_i32_0 = arith.constant 0 : i32
    return %arg0, %c0_i32 : i32, i32
  }
}

module attributes {stable_mosaic.version = 11 : i64} {
  func.func @_matmul_kernel(%arg0: i32, %arg1: memref<128x128xbf16, #tpu.memory_space<vmem>>, %arg2: memref<128x128xbf16, #tpu.memory_space<vmem>>, %arg3: memref<128x128xbf16, #tpu.memory_space<vmem>>) attributes {dimension_semantics = [#tpu.dimension_semantics<parallel>], iteration_bounds = array<i64: 1>, scalar_prefetch = 0 : i64, scratch_operands = 0 : i64, tpu.core_type = #tpu.core_type<tc>, window_params = [{transform_indices = @transform_0, window_bounds = array<i64: 128, 128>}, {pipeline_mode = #tpu.pipeline_mode<synchronous>, transform_indices = @transform_1, window_bounds = array<i64: 128, 128>}, {transform_indices = @transform_2, window_bounds = array<i64: 128, 128>}]} {
    %c0 = arith.constant 0 : index
    %c0_0 = arith.constant 0 : index
    %0 = vector.load %arg1[%c0, %c0_0] : memref<128x128xbf16, #tpu.memory_space<vmem>>, vector<128x128xbf16>
    %c0_1 = arith.constant 0 : index
    %c0_2 = arith.constant 0 : index
    %1 = vector.load %arg2[%c0_1, %c0_2] : memref<128x128xbf16, #tpu.memory_space<vmem>>, vector<128x128xbf16>
    %cst = arith.constant dense<0.000000e+00> : vector<128x128xf32>
    %2 = tpu.matmul %0, %1, %cst {dimension_numbers = #tpu.dot_dimension_numbers<[1], [0], [0], [1], [0, 0, 1, 1], [], []>} : vector<128x128xbf16>, vector<128x128xbf16>, vector<128x128xf32> -> vector<128x128xf32>
    %3 = arith.truncf %2 : vector<128x128xf32> to vector<128x128xbf16>
    %c0_3 = arith.constant 0 : index
    %c0_4 = arith.constant 0 : index
    %4 = vector.load %arg3[%c0_3, %c0_4] : memref<128x128xbf16, #tpu.memory_space<vmem>>, vector<128x128xbf16>
    tpu.vector_store %arg3[%c0_3, %c0_4], %3 {strides = array<i32>} : memref<128x128xbf16, #tpu.memory_space<vmem>>, vector<128x128xbf16>,
    return
  }
  func.func @transform_0(%arg0: i32) -> (i32, i32) {
    %c0_i32 = arith.constant 0 : i32
    %c0_i32_0 = arith.constant 0 : i32
    return %arg0, %c0_i32 : i32, i32
  }
  func.func @transform_1(%arg0: i32) -> (i32, i32) {
    %c0_i32 = arith.constant 0 : i32
    %c0_i32_0 = arith.constant 0 : i32
    %c0_i32_1 = arith.constant 0 : i32
    return %c0_i32, %c0_i32_0 : i32, i32
  }
  func.func @transform_2(%arg0: i32) -> (i32, i32) {
    %c0_i32 = arith.constant 0 : i32
    %c0_i32_0 = arith.constant 0 : i32
    return %arg0, %c0_i32 : i32, i32
  }
}

module attributes {stable_mosaic.version = 11 : i64} {
  func.func @_agg_qkv_kernel(%arg0: i32, %arg1: memref<16x128xbf16, #tpu.memory_space<vmem>>, %arg2: memref<128x128xf32, #tpu.memory_space<vmem>>, %arg3: memref<128x128xbf16, #tpu.memory_space<vmem>>, %arg4: memref<1x128xf32, #tpu.memory_space<vmem>>, %arg5: memref<16x128xf32, #tpu.memory_space<vmem>>, %arg6: memref<16x128xf32, #tpu.memory_space<vmem>>) attributes {dimension_semantics = [#tpu.dimension_semantics<parallel>], iteration_bounds = array<i64: 1>, scalar_prefetch = 0 : i64, scratch_operands = 0 : i64, tpu.core_type = #tpu.core_type<tc>, window_params = [{transform_indices = @transform_0, window_bounds = array<i64: 16, 128>}, {pipeline_mode = #tpu.pipeline_mode<synchronous>, transform_indices = @transform_1, window_bounds = array<i64: 128, 128>}, {pipeline_mode = #tpu.pipeline_mode<synchronous>, transform_indices = @transform_2, window_bounds = array<i64: 128, 128>}, {pipeline_mode = #tpu.pipeline_mode<synchronous>, transform_indices = @transform_3, window_bounds = array<i64: 1, 128>}, {transform_indices = @transform_4, window_bounds = array<i64: 16, 128>}, {transform_indices = @transform_5, window_bounds = array<i64: 16, 128>}]} {
    %c0 = arith.constant 0 : index
    %c0_0 = arith.constant 0 : index
    %0 = vector.load %arg1[%c0, %c0_0] : memref<16x128xbf16, #tpu.memory_space<vmem>>, vector<16x128xbf16>
    %c0_1 = arith.constant 0 : index
    %c0_2 = arith.constant 0 : index
    %1 = vector.load %arg2[%c0_1, %c0_2] : memref<128x128xf32, #tpu.memory_space<vmem>>, vector<128x128xf32>
    %2 = arith.truncf %1 : vector<128x128xf32> to vector<128x128xbf16>
    %cst = arith.constant dense<0.000000e+00> : vector<16x128xf32>
    %3 = tpu.matmul %0, %2, %cst {dimension_numbers = #tpu.dot_dimension_numbers<[1], [0], [0], [1], [0, 0, 1, 1], [], []>} : vector<16x128xbf16>, vector<128x128xbf16>, vector<16x128xf32> -> vector<16x128xf32>
    %c0_3 = arith.constant 0 : index
    %c0_4 = arith.constant 0 : index
    %4 = vector.load %arg5[%c0_3, %c0_4] : memref<16x128xf32, #tpu.memory_space<vmem>>, vector<16x128xf32>
    tpu.vector_store %arg5[%c0_3, %c0_4], %3 {strides = array<i32>} : memref<16x128xf32, #tpu.memory_space<vmem>>, vector<16x128xf32>,
    %5 = arith.truncf %3 : vector<16x128xf32> to vector<16x128xbf16>
    %c0_5 = arith.constant 0 : index
    %c0_6 = arith.constant 0 : index
    %6 = vector.load %arg3[%c0_5, %c0_6] : memref<128x128xbf16, #tpu.memory_space<vmem>>, vector<128x128xbf16>
    %cst_7 = arith.constant dense<0.000000e+00> : vector<16x128xf32>
    %7 = tpu.matmul %5, %6, %cst_7 {dimension_numbers = #tpu.dot_dimension_numbers<[1], [0], [0], [1], [0, 0, 1, 1], [], []>} : vector<16x128xbf16>, vector<128x128xbf16>, vector<16x128xf32> -> vector<16x128xf32>
    %c0_8 = arith.constant 0 : index
    %c0_9 = arith.constant 0 : index
    %8 = vector.load %arg4[%c0_8, %c0_9] : memref<1x128xf32, #tpu.memory_space<vmem>>, vector<1x128xf32>
    %9 = vector.broadcast %8 : vector<1x128xf32> to vector<16x128xf32>
    %10 = arith.addf %7, %9 : vector<16x128xf32>
    %c0_10 = arith.constant 0 : index
    %c0_11 = arith.constant 0 : index
    %11 = vector.load %arg6[%c0_10, %c0_11] : memref<16x128xf32, #tpu.memory_space<vmem>>, vector<16x128xf32>
    tpu.vector_store %arg6[%c0_10, %c0_11], %10 {strides = array<i32>} : memref<16x128xf32, #tpu.memory_space<vmem>>, vector<16x128xf32>,
    return
  }
  func.func @transform_0(%arg0: i32) -> (i32, i32) {
    %c0_i32 = arith.constant 0 : i32
    %c0_i32_0 = arith.constant 0 : i32
    return %arg0, %c0_i32 : i32, i32
  }
  func.func @transform_1(%arg0: i32) -> (i32, i32) {
    %c0_i32 = arith.constant 0 : i32
    %c0_i32_0 = arith.constant 0 : i32
    %c0_i32_1 = arith.constant 0 : i32
    return %c0_i32, %c0_i32_0 : i32, i32
  }
  func.func @transform_2(%arg0: i32) -> (i32, i32) {
    %c0_i32 = arith.constant 0 : i32
    %c0_i32_0 = arith.constant 0 : i32
    %c0_i32_1 = arith.constant 0 : i32
    return %c0_i32, %c0_i32_0 : i32, i32
  }
  func.func @transform_3(%arg0: i32) -> (i32, i32) {
    %c0_i32 = arith.constant 0 : i32
    %c0_i32_0 = arith.constant 0 : i32
    %c0_i32_1 = arith.constant 0 : i32
    return %c0_i32, %c0_i32_0 : i32, i32
  }
  func.func @transform_4(%arg0: i32) -> (i32, i32) {
    %c0_i32 = arith.constant 0 : i32
    %c0_i32_0 = arith.constant 0 : i32
    return %arg0, %c0_i32 : i32, i32
  }
  func.func @transform_5(%arg0: i32) -> (i32, i32) {
    %c0_i32 = arith.constant 0 : i32
    %c0_i32_0 = arith.constant 0 : i32
    return %arg0, %c0_i32 : i32, i32
  }
}

module attributes {stable_mosaic.version = 11 : i64} {
  func.func @_tail_mlp_kernel(%arg0: i32, %arg1: memref<16x128xf32, #tpu.memory_space<vmem>>, %arg2: memref<16x128xf32, #tpu.memory_space<vmem>>, %arg3: memref<8x128xf32, #tpu.memory_space<vmem>>, %arg4: memref<128x128xbf16, #tpu.memory_space<vmem>>, %arg5: memref<1x128xf32, #tpu.memory_space<vmem>>, %arg6: memref<128x128xbf16, #tpu.memory_space<vmem>>, %arg7: memref<128x128xbf16, #tpu.memory_space<vmem>>, %arg8: memref<1x128xf32, #tpu.memory_space<vmem>>, %arg9: memref<128x128xbf16, #tpu.memory_space<vmem>>, %arg10: memref<1x128xf32, #tpu.memory_space<vmem>>, %arg11: memref<16x128xf32, #tpu.memory_space<vmem>>, %arg12: memref<16x128xf32, #tpu.memory_space<vmem>>) attributes {dimension_semantics = [#tpu.dimension_semantics<parallel>], iteration_bounds = array<i64: 1>, scalar_prefetch = 0 : i64, scratch_operands = 0 : i64, tpu.core_type = #tpu.core_type<tc>, window_params = [{transform_indices = @transform_0, window_bounds = array<i64: 16, 128>}, {transform_indices = @transform_1, window_bounds = array<i64: 16, 128>}, {pipeline_mode = #tpu.pipeline_mode<synchronous>, transform_indices = @transform_2, window_bounds = array<i64: 8, 128>}, {pipeline_mode = #tpu.pipeline_mode<synchronous>, transform_indices = @transform_3, window_bounds = array<i64: 128, 128>}, {pipeline_mode = #tpu.pipeline_mode<synchronous>, transform_indices = @transform_4, window_bounds = array<i64: 1, 128>}, {pipeline_mode = #tpu.pipeline_mode<synchronous>, transform_indices = @transform_5, window_bounds = array<i64: 128, 128>}, {pipeline_mode = #tpu.pipeline_mode<synchronous>, transform_indices = @transform_6, window_bounds = array<i64: 128, 128>}, {pipeline_mode = #tpu.pipeline_mode<synchronous>, transform_indices = @transform_7, window_bounds = array<i64: 1, 128>}, {pipeline_mode = #tpu.pipeline_mode<synchronous>, transform_indices = @transform_8, window_bounds = array<i64: 128, 128>}, {pipeline_mode = #tpu.pipeline_mode<synchronous>, transform_indices = @transform_9, window_bounds = array<i64: 1, 128>}, {transform_indices = @transform_10, window_bounds = array<i64: 16, 128>}, {transform_indices = @transform_11, window_bounds = array<i64: 16, 128>}]} {
    %0 = tpu.iota {dimensions = array<i32: 1>} : vector<1x128xi32>
    %c32_i32 = arith.constant 32 : i32
    %1 = vector.broadcast %c32_i32 : i32 to vector<1x128xi32>
    %2 = arith.cmpi slt, %0, %1 : vector<1x128xi32>
    %3 = arith.extui %2 : vector<1x128xi1> to vector<1x128xi32>
    %4 = arith.sitofp %3 : vector<1x128xi32> to vector<1x128xf32>
    %c0 = arith.constant 0 : index
    %c0_0 = arith.constant 0 : index
    %5 = vector.load %arg3[%c0, %c0_0] : memref<8x128xf32, #tpu.memory_space<vmem>>, vector<8x128xf32>
    %6 = vector.extract_strided_slice %5 {offsets = [0, 0], sizes = [1, 128], strides = [1, 1]} : vector<8x128xf32> to vector<1x128xf32>
    %7 = vector.extract_strided_slice %5 {offsets = [1, 0], sizes = [1, 128], strides = [1, 1]} : vector<8x128xf32> to vector<1x128xf32>
    %8 = vector.extract_strided_slice %5 {offsets = [2, 0], sizes = [1, 128], strides = [1, 1]} : vector<8x128xf32> to vector<1x128xf32>
    %9 = vector.extract_strided_slice %5 {offsets = [3, 0], sizes = [1, 128], strides = [1, 1]} : vector<8x128xf32> to vector<1x128xf32>
    %10 = vector.extract_strided_slice %5 {offsets = [4, 0], sizes = [1, 128], strides = [1, 1]} : vector<8x128xf32> to vector<1x128xf32>
    %c0_1 = arith.constant 0 : index
    %c0_2 = arith.constant 0 : index
    %11 = vector.load %arg1[%c0_1, %c0_2] : memref<16x128xf32, #tpu.memory_space<vmem>>, vector<16x128xf32>
    %c0_3 = arith.constant 0 : index
    %c0_4 = arith.constant 0 : index
    %12 = vector.load %arg2[%c0_3, %c0_4] : memref<16x128xf32, #tpu.memory_space<vmem>>, vector<16x128xf32>
    %13 = arith.addf %11, %12 : vector<16x128xf32>
    %14 = vector.broadcast %4 : vector<1x128xf32> to vector<16x128xf32>
    %15 = arith.mulf %13, %14 : vector<16x128xf32>
    %cst = arith.constant dense<0.000000e+00> : vector<16xf32>
    %16 = vector.multi_reduction <add>, %15, %cst [1] : vector<16x128xf32> to vector<16xf32>
    %17 = vector.shape_cast %16 : vector<16xf32> to vector<16x1xf32>
    %cst_5 = arith.constant 3.125000e-02 : f32
    %18 = vector.broadcast %cst_5 : f32 to vector<16x1xf32>
    %19 = arith.mulf %17, %18 : vector<16x1xf32>
    %20 = vector.broadcast %19 : vector<16x1xf32> to vector<16x128xf32>
    %21 = arith.subf %13, %20 : vector<16x128xf32>
    %22 = vector.broadcast %4 : vector<1x128xf32> to vector<16x128xf32>
    %23 = arith.mulf %21, %22 : vector<16x128xf32>
    %24 = arith.mulf %23, %23 : vector<16x128xf32>
    %cst_6 = arith.constant dense<0.000000e+00> : vector<16xf32>
    %25 = vector.multi_reduction <add>, %24, %cst_6 [1] : vector<16x128xf32> to vector<16xf32>
    %26 = vector.shape_cast %25 : vector<16xf32> to vector<16x1xf32>
    %cst_7 = arith.constant 3.125000e-02 : f32
    %27 = vector.broadcast %cst_7 : f32 to vector<16x1xf32>
    %28 = arith.mulf %26, %27 : vector<16x1xf32>
    %cst_8 = arith.constant 9.99999974E-6 : f32
    %29 = vector.broadcast %cst_8 : f32 to vector<16x1xf32>
    %30 = arith.addf %28, %29 : vector<16x1xf32>
    %31 = math.rsqrt %30 : vector<16x1xf32>
    %32 = vector.broadcast %31 : vector<16x1xf32> to vector<16x128xf32>
    %33 = arith.mulf %23, %32 : vector<16x128xf32>
    %34 = vector.broadcast %6 : vector<1x128xf32> to vector<16x128xf32>
    %35 = arith.mulf %33, %34 : vector<16x128xf32>
    %36 = vector.broadcast %7 : vector<1x128xf32> to vector<16x128xf32>
    %37 = arith.addf %35, %36 : vector<16x128xf32>
    %38 = arith.truncf %37 : vector<16x128xf32> to vector<16x128xbf16>
    %c0_9 = arith.constant 0 : index
    %c0_10 = arith.constant 0 : index
    %39 = vector.load %arg4[%c0_9, %c0_10] : memref<128x128xbf16, #tpu.memory_space<vmem>>, vector<128x128xbf16>
    %cst_11 = arith.constant dense<0.000000e+00> : vector<16x128xf32>
    %40 = tpu.matmul %38, %39, %cst_11 {dimension_numbers = #tpu.dot_dimension_numbers<[1], [0], [0], [1], [0, 0, 1, 1], [], []>} : vector<16x128xbf16>, vector<128x128xbf16>, vector<16x128xf32> -> vector<16x128xf32>
    %c0_12 = arith.constant 0 : index
    %c0_13 = arith.constant 0 : index
    %41 = vector.load %arg5[%c0_12, %c0_13] : memref<1x128xf32, #tpu.memory_space<vmem>>, vector<1x128xf32>
    %42 = vector.broadcast %41 : vector<1x128xf32> to vector<16x128xf32>
    %43 = arith.addf %40, %42 : vector<16x128xf32>
    %cst_14 = arith.constant 0.000000e+00 : f32
    %44 = vector.broadcast %cst_14 : f32 to vector<16x128xf32>
    %45 = arith.maximumf %43, %44 : vector<16x128xf32>
    %46 = arith.truncf %45 : vector<16x128xf32> to vector<16x128xbf16>
    %c0_15 = arith.constant 0 : index
    %c0_16 = arith.constant 0 : index
    %47 = vector.load %arg6[%c0_15, %c0_16] : memref<128x128xbf16, #tpu.memory_space<vmem>>, vector<128x128xbf16>
    %cst_17 = arith.constant dense<0.000000e+00> : vector<16x128xf32>
    %48 = tpu.matmul %46, %47, %cst_17 {dimension_numbers = #tpu.dot_dimension_numbers<[1], [0], [0], [1], [0, 0, 1, 1], [], []>} : vector<16x128xbf16>, vector<128x128xbf16>, vector<16x128xf32> -> vector<16x128xf32>
    %49 = vector.broadcast %10 : vector<1x128xf32> to vector<16x128xf32>
    %50 = arith.addf %48, %49 : vector<16x128xf32>
    %51 = arith.addf %37, %50 : vector<16x128xf32>
    %52 = vector.broadcast %4 : vector<1x128xf32> to vector<16x128xf32>
    %53 = arith.mulf %51, %52 : vector<16x128xf32>
    %cst_18 = arith.constant dense<0.000000e+00> : vector<16xf32>
    %54 = vector.multi_reduction <add>, %53, %cst_18 [1] : vector<16x128xf32> to vector<16xf32>
    %55 = vector.shape_cast %54 : vector<16xf32> to vector<16x1xf32>
    %cst_19 = arith.constant 3.125000e-02 : f32
    %56 = vector.broadcast %cst_19 : f32 to vector<16x1xf32>
    %57 = arith.mulf %55, %56 : vector<16x1xf32>
    %58 = vector.broadcast %57 : vector<16x1xf32> to vector<16x128xf32>
    %59 = arith.subf %51, %58 : vector<16x128xf32>
    %60 = vector.broadcast %4 : vector<1x128xf32> to vector<16x128xf32>
    %61 = arith.mulf %59, %60 : vector<16x128xf32>
    %62 = arith.mulf %61, %61 : vector<16x128xf32>
    %cst_20 = arith.constant dense<0.000000e+00> : vector<16xf32>
    %63 = vector.multi_reduction <add>, %62, %cst_20 [1] : vector<16x128xf32> to vector<16xf32>
    %64 = vector.shape_cast %63 : vector<16xf32> to vector<16x1xf32>
    %cst_21 = arith.constant 3.125000e-02 : f32
    %65 = vector.broadcast %cst_21 : f32 to vector<16x1xf32>
    %66 = arith.mulf %64, %65 : vector<16x1xf32>
    %cst_22 = arith.constant 9.99999974E-6 : f32
    %67 = vector.broadcast %cst_22 : f32 to vector<16x1xf32>
    %68 = arith.addf %66, %67 : vector<16x1xf32>
    %69 = math.rsqrt %68 : vector<16x1xf32>
    %70 = vector.broadcast %69 : vector<16x1xf32> to vector<16x128xf32>
    %71 = arith.mulf %61, %70 : vector<16x128xf32>
    %72 = vector.broadcast %8 : vector<1x128xf32> to vector<16x128xf32>
    %73 = arith.mulf %71, %72 : vector<16x128xf32>
    %74 = vector.broadcast %9 : vector<1x128xf32> to vector<16x128xf32>
    %75 = arith.addf %73, %74 : vector<16x128xf32>
    %c0_23 = arith.constant 0 : index
    %c0_24 = arith.constant 0 : index
    %76 = vector.load %arg11[%c0_23, %c0_24] : memref<16x128xf32, #tpu.memory_space<vmem>>, vector<16x128xf32>
    tpu.vector_store %arg11[%c0_23, %c0_24], %75 {strides = array<i32>} : memref<16x128xf32, #tpu.memory_space<vmem>>, vector<16x128xf32>,
    %77 = arith.truncf %75 : vector<16x128xf32> to vector<16x128xbf16>
    %c0_25 = arith.constant 0 : index
    %c0_26 = arith.constant 0 : index
    %78 = vector.load %arg7[%c0_25, %c0_26] : memref<128x128xbf16, #tpu.memory_space<vmem>>, vector<128x128xbf16>
    %cst_27 = arith.constant dense<0.000000e+00> : vector<16x128xf32>
    %79 = tpu.matmul %77, %78, %cst_27 {dimension_numbers = #tpu.dot_dimension_numbers<[1], [0], [0], [1], [0, 0, 1, 1], [], []>} : vector<16x128xbf16>, vector<128x128xbf16>, vector<16x128xf32> -> vector<16x128xf32>
    %c0_28 = arith.constant 0 : index
    %c0_29 = arith.constant 0 : index
    %80 = vector.load %arg8[%c0_28, %c0_29] : memref<1x128xf32, #tpu.memory_space<vmem>>, vector<1x128xf32>
    %81 = vector.broadcast %80 : vector<1x128xf32> to vector<16x128xf32>
    %82 = arith.addf %79, %81 : vector<16x128xf32>
    %cst_30 = arith.constant 0.000000e+00 : f32
    %83 = vector.broadcast %cst_30 : f32 to vector<16x128xf32>
    %84 = arith.maximumf %82, %83 : vector<16x128xf32>
    %85 = arith.truncf %84 : vector<16x128xf32> to vector<16x128xbf16>
    %c0_31 = arith.constant 0 : index
    %c0_32 = arith.constant 0 : index
    %86 = vector.load %arg9[%c0_31, %c0_32] : memref<128x128xbf16, #tpu.memory_space<vmem>>, vector<128x128xbf16>
    %cst_33 = arith.constant dense<0.000000e+00> : vector<16x128xf32>
    %87 = tpu.matmul %85, %86, %cst_33 {dimension_numbers = #tpu.dot_dimension_numbers<[1], [0], [0], [1], [0, 0, 1, 1], [], []>} : vector<16x128xbf16>, vector<128x128xbf16>, vector<16x128xf32> -> vector<16x128xf32>
    %c0_34 = arith.constant 0 : index
    %c0_35 = arith.constant 0 : index
    %88 = vector.load %arg10[%c0_34, %c0_35] : memref<1x128xf32, #tpu.memory_space<vmem>>, vector<1x128xf32>
    %89 = vector.broadcast %88 : vector<1x128xf32> to vector<16x128xf32>
    %90 = arith.addf %87, %89 : vector<16x128xf32>
    %c0_36 = arith.constant 0 : index
    %c0_37 = arith.constant 0 : index
    %91 = vector.load %arg12[%c0_36, %c0_37] : memref<16x128xf32, #tpu.memory_space<vmem>>, vector<16x128xf32>
    tpu.vector_store %arg12[%c0_36, %c0_37], %90 {strides = array<i32>} : memref<16x128xf32, #tpu.memory_space<vmem>>, vector<16x128xf32>,
    return
  }
  func.func @transform_0(%arg0: i32) -> (i32, i32) {
    %c0_i32 = arith.constant 0 : i32
    %c0_i32_0 = arith.constant 0 : i32
    return %arg0, %c0_i32 : i32, i32
  }
  func.func @transform_1(%arg0: i32) -> (i32, i32) {
    %c0_i32 = arith.constant 0 : i32
    %c0_i32_0 = arith.constant 0 : i32
    return %arg0, %c0_i32 : i32, i32
  }
  func.func @transform_2(%arg0: i32) -> (i32, i32) {
    %c0_i32 = arith.constant 0 : i32
    %c0_i32_0 = arith.constant 0 : i32
    %c0_i32_1 = arith.constant 0 : i32
    return %c0_i32, %c0_i32_0 : i32, i32
  }
  func.func @transform_3(%arg0: i32) -> (i32, i32) {
    %c0_i32 = arith.constant 0 : i32
    %c0_i32_0 = arith.constant 0 : i32
    %c0_i32_1 = arith.constant 0 : i32
    return %c0_i32, %c0_i32_0 : i32, i32
  }
  func.func @transform_4(%arg0: i32) -> (i32, i32) {
    %c0_i32 = arith.constant 0 : i32
    %c0_i32_0 = arith.constant 0 : i32
    %c0_i32_1 = arith.constant 0 : i32
    return %c0_i32, %c0_i32_0 : i32, i32
  }
  func.func @transform_5(%arg0: i32) -> (i32, i32) {
    %c0_i32 = arith.constant 0 : i32
    %c0_i32_0 = arith.constant 0 : i32
    %c0_i32_1 = arith.constant 0 : i32
    return %c0_i32, %c0_i32_0 : i32, i32
  }
  func.func @transform_6(%arg0: i32) -> (i32, i32) {
    %c0_i32 = arith.constant 0 : i32
    %c0_i32_0 = arith.constant 0 : i32
    %c0_i32_1 = arith.constant 0 : i32
    return %c0_i32, %c0_i32_0 : i32, i32
  }
  func.func @transform_7(%arg0: i32) -> (i32, i32) {
    %c0_i32 = arith.constant 0 : i32
    %c0_i32_0 = arith.constant 0 : i32
    %c0_i32_1 = arith.constant 0 : i32
    return %c0_i32, %c0_i32_0 : i32, i32
  }
  func.func @transform_8(%arg0: i32) -> (i32, i32) {
    %c0_i32 = arith.constant 0 : i32
    %c0_i32_0 = arith.constant 0 : i32
    %c0_i32_1 = arith.constant 0 : i32
    return %c0_i32, %c0_i32_0 : i32, i32
  }
  func.func @transform_9(%arg0: i32) -> (i32, i32) {
    %c0_i32 = arith.constant 0 : i32
    %c0_i32_0 = arith.constant 0 : i32
    %c0_i32_1 = arith.constant 0 : i32
    return %c0_i32, %c0_i32_0 : i32, i32
  }
  func.func @transform_10(%arg0: i32) -> (i32, i32) {
    %c0_i32 = arith.constant 0 : i32
    %c0_i32_0 = arith.constant 0 : i32
    return %arg0, %c0_i32 : i32, i32
  }
  func.func @transform_11(%arg0: i32) -> (i32, i32) {
    %c0_i32 = arith.constant 0 : i32
    %c0_i32_0 = arith.constant 0 : i32
    return %arg0, %c0_i32 : i32, i32
  }
}

</mosaic_0001>

<bundles_post_ra>
// kernel: fwd.6
= control target key start
LH: loop header
LB: loop body
LE: loop exit
PB: predicated region body
PF: predicated region fallthrough
CT: control target
= control target key end

     0   :  { %v297_v0 = vmov 0.0   ;;  %vm298_vm0 = vmmov 0   ;;  %s437_s1 = inlined_call_operand.vmem [shape: f32[128,128], index: 1, kind: input, shape index: {}]   ;;  %s438_s0 = inlined_call_operand.vmem [shape: bf16[16,128], index: 0, kind: input, shape index: {}]   ;;  %s439_s2 = inlined_call_operand.vmem [shape: bf16[128,128], index: 2, kind: input, shape index: {}]   ;;  %s440_s4 = inlined_call_operand.vmem [shape: f32[16,128], index: 4, kind: output, shape index: {0}]   ;;  %s441_s3 = inlined_call_operand.vmem [shape: f32[1,128], index: 3, kind: input, shape index: {}]   ;;  %s442_s5 = inlined_call_operand.vmem [shape: f32[16,128], index: 5, kind: output, shape index: {1}]  }
   0x1   :  { %246 = vmatprep.subr.bf16.mxu0 %v297_v0  ;;  %v22_v1 = vld [vmem:[%s437_s1] sm:$0xff]  ;;  %v23_v2 = vld [vmem:[%s437_s1 + $0x8] sm:$0xff]  ;;  %v24_v3 = vld [vmem:[%s437_s1 + $0x10] sm:$0xff]  ;;  %262 = vmatprep.mubr.msk.bf16.mxu0 %vm298_vm0, %v297_v0 }
   0x2   :  { %v38_v4 = vpack.c.bf16 %v23_v2, %v22_v1  ;;  %v25_v5 = vld [vmem:[%s437_s1 + $0x18] sm:$0xff]  ;;  %266 = vmatprep.subr.bf16.mxu1 %v297_v0  ;;  %282 = vmatprep.mubr.msk.bf16.mxu1 %vm298_vm0, %v297_v0  ;;  %v26_v7 = vld [vmem:[%s437_s1 + $0x20] sm:$0xff]  ;;  %v27_v8 = vld [vmem:[%s437_s1 + $0x28] sm:$0xff] }
   0x3   :  { %v39_v6 = vpack.c.bf16 %v25_v5, %v24_v3  ;;  %v28_v9 = vld [vmem:[%s437_s1 + $0x30] sm:$0xff]  ;;  %v40_v10 = vpack.c.bf16 %v27_v8, %v26_v7  ;;  %v289_v11 = vld [vmem:[%s439_s2] sm:$0xff]   ;;  %v29_v12 = vld [vmem:[%s437_s1 + $0x38] sm:$0xff] }
   0x4   :  { %247 = vmatpush3.bf16.msra.mxu0 %v38_v4  ;;  %267 = vmatpush3.bf16.msra.mxu1 %v289_v11  ;;  %v290_v13 = vld [vmem:[%s439_s2 + $0x8] sm:$0xff]   ;;  %v41_v14 = vpack.c.bf16 %v29_v12, %v28_v9  ;;  %v30_v15 = vld [vmem:[%s437_s1 + $0x40] sm:$0xff]  ;;  %v291_v17 = vld [vmem:[%s439_s2 + $0x10] sm:$0xff]  }
   0x5   :  { %248 = vmatprep.subr.bf16.mxu0 %v297_v0  ;;  %268 = vmatprep.subr.bf16.mxu1 %v297_v0  ;;  %v31_v16 = vld [vmem:[%s437_s1 + $0x48] sm:$0xff]  ;;  %v32_v19 = vld [vmem:[%s437_s1 + $0x50] sm:$0xff]  ;;  %v33_v20 = vld [vmem:[%s437_s1 + $0x58] sm:$0xff] }
   0x6   :  { %v42_v18 = vpack.c.bf16 %v31_v16, %v30_v15  ;;  %v292_v21 = vld [vmem:[%s439_s2 + $0x18] sm:$0xff]   ;;  %v43_v22 = vpack.c.bf16 %v33_v20, %v32_v19  ;;  %v34_v23 = vld [vmem:[%s437_s1 + $0x60] sm:$0xff]  ;;  %v35_v24 = vld [vmem:[%s437_s1 + $0x68] sm:$0xff] }
   0x7   :  { %v293_v25 = vld [vmem:[%s439_s2 + $0x20] sm:$0xff]   ;;  %v44_v26 = vpack.c.bf16 %v35_v24, %v34_v23  ;;  %v36_v27 = vld [vmem:[%s437_s1 + $0x70] sm:$0xff]  ;;  %v37_v28 = vld [vmem:[%s437_s1 + $0x78] sm:$0xff] }
   0x8   :  { %249 = vmatpush3.bf16.msra.mxu0 %v39_v6  ;;  %269 = vmatpush3.bf16.msra.mxu1 %v290_v13  ;;  %v294_v29 = vld [vmem:[%s439_s2 + $0x28] sm:$0xff]   ;;  %v45_v30 = vpack.c.bf16 %v37_v28, %v36_v27  ;;  %v295_v31 = vld [vmem:[%s439_s2 + $0x30] sm:$0xff]   ;;  %v288_v32 = vld [vmem:[%s438_s0] sm:$0xff]  }
   0x9   :  { %250 = vmatprep.subr.bf16.mxu0 %v297_v0  ;;  %270 = vmatprep.subr.bf16.mxu1 %v297_v0  ;;  %v296_v33 = vld [vmem:[%s439_s2 + $0x38] sm:$0xff]   ;;  %v219_v39 = vld [vmem:[%s441_s3] ss:$0 sm:$0xff] }
   0xc   :  { %251 = vmatpush3.bf16.msra.mxu0 %v40_v10  ;;  %271 = vmatpush3.bf16.msra.mxu1 %v291_v17 }
   0xd   :  { %252 = vmatprep.subr.bf16.mxu0 %v297_v0  ;;  %272 = vmatprep.subr.bf16.mxu1 %v297_v0 }
  0x10   :  { %253 = vmatpush3.bf16.msra.mxu0 %v41_v14  ;;  %273 = vmatpush3.bf16.msra.mxu1 %v292_v21 }
  0x11   :  { %254 = vmatprep.subr.bf16.mxu0 %v297_v0  ;;  %274 = vmatprep.subr.bf16.mxu1 %v297_v0 }
  0x14   :  { %255 = vmatpush3.bf16.msra.mxu0 %v42_v18  ;;  %275 = vmatpush3.bf16.msra.mxu1 %v293_v25 }
  0x15   :  { %256 = vmatprep.subr.bf16.mxu0 %v297_v0  ;;  %276 = vmatprep.subr.bf16.mxu1 %v297_v0 }
  0x18   :  { %257 = vmatpush3.bf16.msra.mxu0 %v43_v22  ;;  %277 = vmatpush3.bf16.msra.mxu1 %v294_v29 }
  0x19   :  { %258 = vmatprep.subr.bf16.mxu0 %v297_v0  ;;  %278 = vmatprep.subr.bf16.mxu1 %v297_v0 }
  0x1c   :  { %259 = vmatpush3.bf16.msra.mxu0 %v44_v26  ;;  %279 = vmatpush3.bf16.msra.mxu1 %v295_v31 }
  0x1d   :  { %260 = vmatprep.subr.bf16.mxu0 %v297_v0  ;;  %280 = vmatprep.subr.bf16.mxu1 %v297_v0 }
  0x20   :  { %261 = vmatpush3.bf16.msra.mxu0 %v45_v30  ;;  %281 = vmatpush3.bf16.msra.mxu1 %v296_v33 }
  0x23   :  { %263 = vmatmul.mubr.bf16.vlgmr.msra.gmra.mrb[0].mxu0 %v288_v32 }
  0xf6   :  { %v86_v34 = vpop.f32.mrb[0].mxu0 }
  0xf7   :  { %93 = vst [vmem:[%s440_s4] sm:$0xff] %v86_v34  ;;  %v264_v35 = vpop.f32.mrb[1].mxu0 }
  0xf8   :  { %v89_v36 = vpop.f32.mrb[2].mxu0 }
  0xf9   :  { %94 = vst [vmem:[%s440_s4 + $0x8] sm:$0xff] %v89_v36  ;;  %v95_v37 = vpack.c.bf16 %v89_v36, %v86_v34  ;;  %v265_v38 = vpop.f32.mrb[3].mxu0 }
  0xfb   :  { %283 = vmatmul.mubr.bf16.vlgmr.msra.gmra.mrb[0].mxu1 %v95_v37 }
 0x1ce   :  { %v201_v40 = vpop.f32.mrb[0].mxu1 }
 0x1cf   :  { %v202_v41 = vadd.f32 %v219_v39, %v201_v40  ;;  %v284_v42 = vpop.f32.mrb[1].mxu1 }
 0x1d0   :  { %v204_v43 = vpop.f32.mrb[2].mxu1 }
 0x1d1   :  { %208 = vst [vmem:[%s442_s5] sm:$0xff] %v202_v41  ;;  %v205_v44 = vadd.f32 %v219_v39, %v204_v43  ;;  %v285_v45 = vpop.f32.mrb[3].mxu1 }
 0x1d3   :  { %209 = vst [vmem:[%s442_s5 + $0x8] sm:$0xff] %v205_v44 }

// kernel: fwd.4
= control target key start
LH: loop header
LB: loop body
LE: loop exit
PB: predicated region body
PF: predicated region fallthrough
CT: control target
= control target key end

     0   :  { %7 = vsyncpa [#allocation3], 0  ;;  %s538_s9 = smov [#allocation2]   ;;  %s616_s0 = inlined_call_operand.hbm [shape: bf16[128,128], index: 0, kind: input, shape index: {}]   ;;  %s617_s1 = inlined_call_operand.vmem [shape: bf16[128,128], index: 1, kind: input, shape index: {}]   ;;  %s618_s2 = inlined_call_operand.vmem [shape: bf16[128,128], index: 2, kind: output, shape index: {}]  }
   0x1   :  { %s13_s10 = sshll.u32 %s538_s9, 4  ;;  %s514_s13 = scalar_lea.hbm %s616_s0, 1024  ;;  %s14_s10 = int_to_ptr.vmem [resolvable:$true] %s13_s10 }
   0x2   :  { %p515_p0 = scmp.ne.s32.totalorder %s616_s0, %s514_s13  ;;  %p518_p1 = scmp.lt.u32.totalorder %s514_s13, %s616_s0 }
   0x4   :  { %p520_p2 = pnand %p518_p1, %p515_p0 }
   0x6   :  { %523 = shalt.err (!%p520_p2)
}
   0x7   :  { %s524_s18 = scalar_lea.vmem %s14_s10, 1024  ;;  %p529_p4 = scmp.lt.s32.totalorder %s14_s10, %s14_s10 }
   0x8   :  { %p525_p3 = scmp.ne.s32.totalorder %s14_s10, %s524_s18  ;;  %p530_p5 = scmp.lt.s32.totalorder %s524_s18, %s524_s18 }
   0xa   :  { %p531_p6 = por %p530_p5, %p529_p4 }
   0xc   :  { %p532_p7 = pnand %p531_p6, %p525_p3 }
   0xe   :  { %535 = shalt.err (!%p532_p7)
}
   0xf   :  { %s539_s19 = smov 64   ;;  %s540_s20 = smov 4  }
  0x10   :  { %19 = dma.hbm_to_vmem [thread:$0]  %s616_s0, 1024, %s14_s10, [#allocation3], %s539_s19, %s539_s19, %s540_s20  }
  0x11   :  { %536 = dma.done.wait [#allocation3], 1024  }
  0x12   :  { %537 = vsyncadd [#allocation3], 4294966272  ;;  %v498_v0 = vld [vmem:[%s617_s1] sm:$0xff]   ;;  %v499_v1 = vld [vmem:[%s617_s1 + $0x8] sm:$0xff]  }
  0x13   :  { %447 = vmatprep.subr.bf16.mxu0 %v498_v0  ;;  %479 = vmatprep.subr.bf16.mxu1 %v498_v0  ;;  %v500_v2 = vld [vmem:[%s617_s1 + $0x10] sm:$0xff]   ;;  %v501_v3 = vld [vmem:[%s617_s1 + $0x18] sm:$0xff]   ;;  %v506_v4 = vld [vmem:[#allocation2] sm:$0xff]  }
  0x14   :  { %448 = vmatpush3.bf16.msra.mxu0 %v498_v0  ;;  %487 = vmatpush3.bf16.msra.mxu1 %v498_v0  ;;  %v507_v5 = vld [vmem:[#allocation2 + $0x20] sm:$0xff]   ;;  %v503_v7 = vld [vmem:[%s617_s1 + $0x28] sm:$0xff]   ;;  %v504_v8 = vld [vmem:[%s617_s1 + $0x30] sm:$0xff]  }
  0x15   :  { %449 = vmatprep.subr.bf16.mxu0 %v499_v1  ;;  %480 = vmatprep.subr.bf16.mxu1 %v499_v1  ;;  %v502_v6 = vld [vmem:[%s617_s1 + $0x20] sm:$0xff]   ;;  %v505_v9 = vld [vmem:[%s617_s1 + $0x38] sm:$0xff]   ;;  %v508_v10 = vld [vmem:[#allocation2 + $0x8] sm:$0xff]  }
  0x16   :  { %463 = vmatprep.mubr.bf16.mxu0 %v506_v4  ;;  %471 = vmatprep.mubr.bf16.mxu1 %v507_v5  ;;  %v509_v11 = vld [vmem:[#allocation2 + $0x28] sm:$0xff]   ;;  %v510_v12 = vld [vmem:[#allocation2 + $0x10] sm:$0xff]   ;;  %v512_v14 = vld [vmem:[#allocation2 + $0x18] sm:$0xff]  }
  0x17   :  { %v511_v13 = vld [vmem:[#allocation2 + $0x30] sm:$0xff]   ;;  %v513_v15 = vld [vmem:[#allocation2 + $0x38] sm:$0xff]  }
  0x18   :  { %450 = vmatpush3.bf16.msra.mxu0 %v499_v1  ;;  %488 = vmatpush3.bf16.msra.mxu1 %v499_v1 }
  0x19   :  { %451 = vmatprep.subr.bf16.mxu0 %v500_v2  ;;  %481 = vmatprep.subr.bf16.mxu1 %v500_v2 }
  0x1c   :  { %452 = vmatpush3.bf16.msra.mxu0 %v500_v2  ;;  %489 = vmatpush3.bf16.msra.mxu1 %v500_v2 }
  0x1d   :  { %453 = vmatprep.subr.bf16.mxu0 %v501_v3  ;;  %482 = vmatprep.subr.bf16.mxu1 %v501_v3 }
  0x20   :  { %454 = vmatpush3.bf16.msra.mxu0 %v501_v3  ;;  %490 = vmatpush3.bf16.msra.mxu1 %v501_v3 }
  0x21   :  { %455 = vmatprep.subr.bf16.mxu0 %v502_v6  ;;  %483 = vmatprep.subr.bf16.mxu1 %v502_v6 }
  0x24   :  { %456 = vmatpush3.bf16.msra.mxu0 %v502_v6  ;;  %491 = vmatpush3.bf16.msra.mxu1 %v502_v6 }
  0x25   :  { %457 = vmatprep.subr.bf16.mxu0 %v503_v7  ;;  %484 = vmatprep.subr.bf16.mxu1 %v503_v7 }
  0x28   :  { %458 = vmatpush3.bf16.msra.mxu0 %v503_v7  ;;  %492 = vmatpush3.bf16.msra.mxu1 %v503_v7 }
  0x29   :  { %459 = vmatprep.subr.bf16.mxu0 %v504_v8  ;;  %485 = vmatprep.subr.bf16.mxu1 %v504_v8 }
  0x2c   :  { %460 = vmatpush3.bf16.msra.mxu0 %v504_v8  ;;  %493 = vmatpush3.bf16.msra.mxu1 %v504_v8 }
  0x2d   :  { %461 = vmatprep.subr.bf16.mxu0 %v505_v9  ;;  %486 = vmatprep.subr.bf16.mxu1 %v505_v9 }
  0x30   :  { %462 = vmatpush3.bf16.msra.mxu0 %v505_v9  ;;  %494 = vmatpush3.bf16.msra.mxu1 %v505_v9 }
  0x33   :  { %464 = vmatmul.mubr.bf16.vlgmr.msra.gmra.mrb[0].mxu0 %v508_v10  ;;  %472 = vmatmul.mubr.bf16.vlgmr.msra.gmra.mrb[0].mxu1 %v509_v11 }
  0x34   :  { %467 = vmatprep.mubr.bf16.mxu0 %v510_v12  ;;  %475 = vmatprep.mubr.bf16.mxu1 %v511_v13 }
  0x3b   :  { %468 = vmatmul.mubr.bf16.gmra.mrb[4].mxu0 %v512_v14  ;;  %476 = vmatmul.mubr.bf16.gmra.mrb[4].mxu1 %v513_v15 }
 0x106   :  { %v465_v16 = vpop.f32.mrb[0].mxu0  ;;  %v473_v17 = vpop.f32.mrb[0].mxu1 }
 0x107   :  { %v188_v18 = vpop.f32.mrb[1].mxu0  ;;  %v220_v19 = vpop.f32.mrb[1].mxu1 }
 0x108   :  { %v466_v20 = vpop.f32.mrb[2].mxu0  ;;  %v474_v21 = vpop.f32.mrb[2].mxu1 }
 0x109   :  { %v392_v22 = vpack.c.bf16 %v466_v20, %v465_v16  ;;  %v412_v23 = vpack.c.bf16 %v474_v21, %v473_v17  ;;  %v191_v24 = vpop.f32.mrb[3].mxu0  ;;  %v223_v25 = vpop.f32.mrb[3].mxu1 }
 0x10a   :  { %v387_v26 = vpack.c.bf16 %v191_v24, %v188_v18  ;;  %v407_v27 = vpack.c.bf16 %v223_v25, %v220_v19 }
 0x10b   :  { %424 = vst [vmem:[%s618_s2 + $0x8] sm:$0xff] %v392_v22   ;;  %428 = vst [vmem:[%s618_s2 + $0x28] sm:$0xff] %v412_v23  }
 0x10c   :  { %388 = vst [vmem:[%s618_s2] sm:$0xff] %v387_v26   ;;  %427 = vst [vmem:[%s618_s2 + $0x20] sm:$0xff] %v407_v27  }
 0x10e   :  { %v469_v28 = vpop.f32.mrb[4].mxu0  ;;  %v477_v29 = vpop.f32.mrb[4].mxu1 }
 0x10f   :  { %v204_v30 = vpop.f32.mrb[5].mxu0  ;;  %v236_v31 = vpop.f32.mrb[5].mxu1 }
 0x110   :  { %v470_v32 = vpop.f32.mrb[6].mxu0  ;;  %v478_v33 = vpop.f32.mrb[6].mxu1 }
 0x111   :  { %v402_v34 = vpack.c.bf16 %v470_v32, %v469_v28  ;;  %v422_v35 = vpack.c.bf16 %v478_v33, %v477_v29  ;;  %v207_v36 = vpop.f32.mrb[7].mxu0  ;;  %v239_v37 = vpop.f32.mrb[7].mxu1 }
 0x112   :  { %v397_v38 = vpack.c.bf16 %v207_v36, %v204_v30  ;;  %v417_v39 = vpack.c.bf16 %v239_v37, %v236_v31 }
 0x113   :  { %426 = vst [vmem:[%s618_s2 + $0x18] sm:$0xff] %v402_v34   ;;  %430 = vst [vmem:[%s618_s2 + $0x38] sm:$0xff] %v422_v35  }
 0x114   :  { %425 = vst [vmem:[%s618_s2 + $0x10] sm:$0xff] %v397_v38   ;;  %429 = vst [vmem:[%s618_s2 + $0x30] sm:$0xff] %v417_v39  }
 0x115   :  { %335 = vsyncpa [#allocation3], 1 }

// kernel: fwd.5
= control target key start
LH: loop header
LB: loop body
LE: loop exit
PB: predicated region body
PF: predicated region fallthrough
CT: control target
= control target key end

     0   :  { %s964_s1 = inlined_call_operand.vmem [shape: bf16[128,128], index: 1, kind: input, shape index: {}]   ;;  %s965_s0 = inlined_call_operand.vmem [shape: bf16[128,128], index: 0, kind: input, shape index: {}]   ;;  %s966_s3 = inlined_call_operand.vmem [shape: bf16[128,128], index: 3, kind: input, shape index: {}]   ;;  %s967_s2 = inlined_call_operand.vmem [shape: f32[1,128], index: 2, kind: input, shape index: {}]   ;;  %s968_s4 = inlined_call_operand.vmem [shape: f32[1,128], index: 4, kind: input, shape index: {}]   ;;  %s969_s5 = inlined_call_operand.vmem [shape: f32[1,128], index: 5, kind: input, shape index: {}]   ;;  %s970_s6 = inlined_call_operand.vmem [shape: f32[128,128], index: 6, kind: output, shape index: {}]  }
   0x1   :  { %v740_v0 = vld [vmem:[%s964_s1] sm:$0xff]   ;;  %v741_v1 = vld [vmem:[%s964_s1 + $0x8] sm:$0xff]   ;;  %v742_v2 = vld [vmem:[%s964_s1 + $0x10] sm:$0xff]  }
   0x2   :  { %676 = vmatprep.subr.bf16.mxu0 %v740_v0  ;;  %v743_v3 = vld [vmem:[%s964_s1 + $0x18] sm:$0xff]   ;;  %v748_v4 = vld [vmem:[%s965_s0] sm:$0xff]   ;;  %v745_v6 = vld [vmem:[%s964_s1 + $0x28] sm:$0xff]  }
   0x3   :  { %677 = vmatpush3.bf16.msra.mxu0 %v740_v0  ;;  %692 = vmatprep.mubr.bf16.mxu0 %v748_v4  ;;  %v744_v5 = vld [vmem:[%s964_s1 + $0x20] sm:$0xff]   ;;  %v757_v8 = vld [vmem:[%s966_s3 + $0x8] sm:$0xff]   ;;  %v746_v9 = vld [vmem:[%s964_s1 + $0x30] sm:$0xff]  }
   0x4   :  { %678 = vmatprep.subr.bf16.mxu0 %v741_v1  ;;  %v756_v7 = vld [vmem:[%s966_s3] sm:$0xff]   ;;  %v758_v10 = vld [vmem:[%s966_s3 + $0x10] sm:$0xff]   ;;  %v747_v11 = vld [vmem:[%s964_s1 + $0x38] sm:$0xff]  }
   0x5   :  { %708 = vmatprep.subr.bf16.mxu1 %v756_v7  ;;  %v759_v12 = vld [vmem:[%s966_s3 + $0x18] sm:$0xff]   ;;  %v760_v13 = vld [vmem:[%s966_s3 + $0x20] sm:$0xff]   ;;  %v749_v14 = vld [vmem:[%s965_s0 + $0x8] sm:$0xff]  }
   0x6   :  { %709 = vmatpush3.bf16.msra.mxu1 %v756_v7  ;;  %v750_v15 = vld [vmem:[%s965_s0 + $0x10] sm:$0xff]   ;;  %v761_v16 = vld [vmem:[%s966_s3 + $0x28] sm:$0xff]   ;;  %v751_v17 = vld [vmem:[%s965_s0 + $0x18] sm:$0xff]  }
   0x7   :  { %679 = vmatpush3.bf16.msra.mxu0 %v741_v1  ;;  %710 = vmatprep.subr.bf16.mxu1 %v757_v8  ;;  %v752_v18 = vld [vmem:[%s965_s0 + $0x20] sm:$0xff]   ;;  %v753_v19 = vld [vmem:[%s965_s0 + $0x28] sm:$0xff]   ;;  %v754_v20 = vld [vmem:[%s965_s0 + $0x30] sm:$0xff]  }
   0x8   :  { %680 = vmatprep.subr.bf16.mxu0 %v742_v2  ;;  %v755_v21 = vld [vmem:[%s965_s0 + $0x38] sm:$0xff]   ;;  %v762_v22 = vld [vmem:[%s966_s3 + $0x30] sm:$0xff]   ;;  %v633_v24 = vld [vmem:[%s967_s2] ss:$0 sm:$0xff] }
   0x9   :  { %v763_v23 = vld [vmem:[%s966_s3 + $0x38] sm:$0xff]  }
   0xa   :  { %711 = vmatpush3.bf16.msra.mxu1 %v757_v8 }
   0xb   :  { %681 = vmatpush3.bf16.msra.mxu0 %v742_v2  ;;  %712 = vmatprep.subr.bf16.mxu1 %v758_v10 }
   0xc   :  { %682 = vmatprep.subr.bf16.mxu0 %v743_v3 }
   0xe   :  { %713 = vmatpush3.bf16.msra.mxu1 %v758_v10 }
   0xf   :  { %683 = vmatpush3.bf16.msra.mxu0 %v743_v3  ;;  %714 = vmatprep.subr.bf16.mxu1 %v759_v12 }
  0x10   :  { %684 = vmatprep.subr.bf16.mxu0 %v744_v5 }
  0x12   :  { %715 = vmatpush3.bf16.msra.mxu1 %v759_v12 }
  0x13   :  { %685 = vmatpush3.bf16.msra.mxu0 %v744_v5  ;;  %716 = vmatprep.subr.bf16.mxu1 %v760_v13 }
  0x14   :  { %686 = vmatprep.subr.bf16.mxu0 %v745_v6 }
  0x16   :  { %717 = vmatpush3.bf16.msra.mxu1 %v760_v13 }
  0x17   :  { %687 = vmatpush3.bf16.msra.mxu0 %v745_v6  ;;  %718 = vmatprep.subr.bf16.mxu1 %v761_v16 }
  0x18   :  { %688 = vmatprep.subr.bf16.mxu0 %v746_v9 }
  0x1a   :  { %719 = vmatpush3.bf16.msra.mxu1 %v761_v16 }
  0x1b   :  { %689 = vmatpush3.bf16.msra.mxu0 %v746_v9  ;;  %720 = vmatprep.subr.bf16.mxu1 %v762_v22 }
  0x1c   :  { %690 = vmatprep.subr.bf16.mxu0 %v747_v11 }
  0x1e   :  { %721 = vmatpush3.bf16.msra.mxu1 %v762_v22 }
  0x1f   :  { %691 = vmatpush3.bf16.msra.mxu0 %v747_v11  ;;  %722 = vmatprep.subr.bf16.mxu1 %v763_v23 }
  0x22   :  { %693 = vmatmul.mubr.bf16.vlgmr.msra.gmra.mrb[0].mxu0 %v749_v14  ;;  %723 = vmatpush3.bf16.msra.mxu1 %v763_v23 }
  0x23   :  { %696 = vmatprep.mubr.bf16.mxu0 %v750_v15 }
  0x2a   :  { %697 = vmatmul.mubr.bf16.gmra.mrb[4].mxu0 %v751_v17  ;;  %v877_v17 = vld [vmem:[%s968_s4] ss:$0 sm:$0xff] }
  0x2b   :  { %700 = vmatprep.mubr.bf16.mxu0 %v752_v18 }
  0x32   :  { %701 = vmatmul.mubr.bf16.gmra.mrb[8].mxu0 %v753_v19 }
  0x33   :  { %704 = vmatprep.mubr.bf16.mxu0 %v754_v20 }
  0x3a   :  { %705 = vmatmul.mubr.bf16.gmra.mrb[12].mxu0 %v755_v21  ;;  %v883_v21 = vld [vmem:[%s969_s5] ss:$0 sm:$0xff] }
  0xf5   :  { %v694_v25 = vpop.f32.mrb[0].mxu0 }
  0xf6   :  { %v350_v26 = vadd.f32 %v694_v25, %v633_v24  ;;  %v227_v27 = vpop.f32.mrb[1].mxu0 }
  0xf7   :  { %v348_v28 = vadd.f32 %v633_v24, %v227_v27  ;;  %v695_v29 = vpop.f32.mrb[2].mxu0 }
  0xf8   :  { %v351_v30 = vadd.f32 %v695_v29, %v633_v24  ;;  %v230_v31 = vpop.f32.mrb[3].mxu0  ;;  %v366_v33 = vmax.f32 %v350_v26, 0.0 }
  0xf9   :  { %v349_v32 = vadd.f32 %v633_v24, %v230_v31  ;;  %v364_v35 = vmax.f32 %v348_v28, 0.0 }
  0xfa   :  { %v367_v34 = vmax.f32 %v351_v30, 0.0 }
  0xfb   :  { %v365_v36 = vmax.f32 %v349_v32, 0.0 }
  0xfc   :  { %v381_v37 = vpack.c.bf16 %v367_v34, %v366_v33 }
  0xfd   :  { %v698_v38 = vpop.f32.mrb[4].mxu0  ;;  %v380_v39 = vpack.c.bf16 %v365_v36, %v364_v35 }
  0xfe   :  { %v354_v40 = vadd.f32 %v698_v38, %v633_v24  ;;  %v243_v41 = vpop.f32.mrb[5].mxu0 }
  0xff   :  { %v352_v42 = vadd.f32 %v633_v24, %v243_v41  ;;  %v699_v43 = vpop.f32.mrb[6].mxu0  ;;  %724 = vmatprep.mubr.bf16.mxu1 %v380_v39 }
 0x100   :  { %v355_v44 = vadd.f32 %v699_v43, %v633_v24  ;;  %v246_v45 = vpop.f32.mrb[7].mxu0  ;;  %725 = vmatmul.mubr.bf16.vlgmr.msra.gmra.mrb[0].mxu1 %v381_v37  ;;  %v370_v47 = vmax.f32 %v354_v40, 0.0 }
 0x101   :  { %v353_v46 = vadd.f32 %v633_v24, %v246_v45  ;;  %v368_v49 = vmax.f32 %v352_v42, 0.0 }
 0x102   :  { %v371_v48 = vmax.f32 %v355_v44, 0.0 }
 0x103   :  { %v369_v50 = vmax.f32 %v353_v46, 0.0 }
 0x104   :  { %v383_v51 = vpack.c.bf16 %v371_v48, %v370_v47 }
 0x105   :  { %v382_v52 = vpack.c.bf16 %v369_v50, %v368_v49  ;;  %v702_v53 = vpop.f32.mrb[8].mxu0 }
 0x106   :  { %v358_v54 = vadd.f32 %v702_v53, %v633_v24  ;;  %v259_v55 = vpop.f32.mrb[9].mxu0 }
 0x107   :  { %v356_v56 = vadd.f32 %v633_v24, %v259_v55  ;;  %v703_v57 = vpop.f32.mrb[10].mxu0  ;;  %728 = vmatprep.mubr.bf16.mxu1 %v382_v52 }
 0x108   :  { %v359_v58 = vadd.f32 %v703_v57, %v633_v24  ;;  %v262_v59 = vpop.f32.mrb[11].mxu0  ;;  %729 = vmatmul.mubr.bf16.gmra.mrb[4].mxu1 %v383_v51  ;;  %v374_v61 = vmax.f32 %v358_v54, 0.0 }
 0x109   :  { %v357_v60 = vadd.f32 %v633_v24, %v262_v59  ;;  %v372_v63 = vmax.f32 %v356_v56, 0.0 }
 0x10a   :  { %v375_v62 = vmax.f32 %v359_v58, 0.0 }
 0x10b   :  { %v373_v0 = vmax.f32 %v357_v60, 0.0 }
 0x10c   :  { %v385_v1 = vpack.c.bf16 %v375_v62, %v374_v61 }
 0x10d   :  { %v384_v2 = vpack.c.bf16 %v373_v0, %v372_v63  ;;  %v706_v3 = vpop.f32.mrb[12].mxu0 }
 0x10e   :  { %v362_v4 = vadd.f32 %v706_v3, %v633_v24  ;;  %v275_v5 = vpop.f32.mrb[13].mxu0 }
 0x10f   :  { %v360_v6 = vadd.f32 %v633_v24, %v275_v5  ;;  %v707_v7 = vpop.f32.mrb[14].mxu0  ;;  %732 = vmatprep.mubr.bf16.mxu1 %v384_v2 }
 0x110   :  { %v363_v8 = vadd.f32 %v707_v7, %v633_v24  ;;  %v278_v9 = vpop.f32.mrb[15].mxu0  ;;  %733 = vmatmul.mubr.bf16.gmra.mrb[8].mxu1 %v385_v1  ;;  %v378_v11 = vmax.f32 %v362_v4, 0.0 }
 0x111   :  { %v361_v10 = vadd.f32 %v633_v24, %v278_v9  ;;  %v376_v13 = vmax.f32 %v360_v6, 0.0 }
 0x112   :  { %v379_v12 = vmax.f32 %v363_v8, 0.0 }
 0x113   :  { %v377_v14 = vmax.f32 %v361_v10, 0.0 }
 0x114   :  { %v387_v15 = vpack.c.bf16 %v379_v12, %v378_v11 }
 0x115   :  { %v386_v16 = vpack.c.bf16 %v377_v14, %v376_v13 }
 0x117   :  { %736 = vmatprep.mubr.bf16.mxu1 %v386_v16 }
 0x118   :  { %737 = vmatmul.mubr.bf16.gmra.mrb[12].mxu1 %v387_v15 }
 0x1d3   :  { %v726_v18 = vpop.f32.mrb[0].mxu1 }
 0x1d4   :  { %v502_v19 = vadd.f32 %v726_v18, %v877_v17  ;;  %v493_v20 = vpop.f32.mrb[1].mxu1 }
 0x1d5   :  { %v494_v22 = vadd.f32 %v877_v17, %v493_v20  ;;  %v727_v23 = vpop.f32.mrb[2].mxu1 }
 0x1d6   :  { %v558_v24 = vmax.f32 %v502_v19, 0.0  ;;  %v505_v25 = vadd.f32 %v727_v23, %v877_v17  ;;  %v496_v26 = vpop.f32.mrb[3].mxu1 }
 0x1d7   :  { %v556_v27 = vmax.f32 %v494_v22, 0.0  ;;  %v497_v28 = vadd.f32 %v877_v17, %v496_v26 }
 0x1d8   :  { %v581_v29 = vadd.f32 %v883_v21, %v558_v24  ;;  %v559_v30 = vmax.f32 %v505_v25, 0.0 }
 0x1d9   :  { %v579_v31 = vadd.f32 %v883_v21, %v556_v27  ;;  %v557_v32 = vmax.f32 %v497_v28, 0.0 }
 0x1da   :  { %597 = vst [vmem:[%s970_s6 + $0x10] sm:$0xff] %v581_v29  ;;  %v582_v33 = vadd.f32 %v883_v21, %v559_v30 }
 0x1db   :  { %595 = vst [vmem:[%s970_s6] sm:$0xff] %v579_v31  ;;  %v580_v34 = vadd.f32 %v883_v21, %v557_v32  ;;  %v730_v35 = vpop.f32.mrb[4].mxu1 }
 0x1dc   :  { %598 = vst [vmem:[%s970_s6 + $0x18] sm:$0xff] %v582_v33  ;;  %v518_v36 = vadd.f32 %v730_v35, %v877_v17  ;;  %v509_v37 = vpop.f32.mrb[5].mxu1 }
 0x1dd   :  { %596 = vst [vmem:[%s970_s6 + $0x8] sm:$0xff] %v580_v34  ;;  %v510_v38 = vadd.f32 %v877_v17, %v509_v37  ;;  %v731_v39 = vpop.f32.mrb[6].mxu1 }
 0x1de   :  { %v562_v40 = vmax.f32 %v518_v36, 0.0  ;;  %v521_v41 = vadd.f32 %v731_v39, %v877_v17  ;;  %v512_v42 = vpop.f32.mrb[7].mxu1 }
 0x1df   :  { %v560_v43 = vmax.f32 %v510_v38, 0.0  ;;  %v513_v44 = vadd.f32 %v877_v17, %v512_v42 }
 0x1e0   :  { %v585_v45 = vadd.f32 %v883_v21, %v562_v40  ;;  %v563_v46 = vmax.f32 %v521_v41, 0.0 }
 0x1e1   :  { %v583_v47 = vadd.f32 %v883_v21, %v560_v43  ;;  %v561_v48 = vmax.f32 %v513_v44, 0.0 }
 0x1e2   :  { %601 = vst [vmem:[%s970_s6 + $0x30] sm:$0xff] %v585_v45  ;;  %v586_v49 = vadd.f32 %v883_v21, %v563_v46 }
 0x1e3   :  { %599 = vst [vmem:[%s970_s6 + $0x20] sm:$0xff] %v583_v47  ;;  %v584_v50 = vadd.f32 %v883_v21, %v561_v48  ;;  %v734_v51 = vpop.f32.mrb[8].mxu1 }
 0x1e4   :  { %602 = vst [vmem:[%s970_s6 + $0x38] sm:$0xff] %v586_v49  ;;  %v534_v52 = vadd.f32 %v734_v51, %v877_v17  ;;  %v525_v53 = vpop.f32.mrb[9].mxu1 }
 0x1e5   :  { %600 = vst [vmem:[%s970_s6 + $0x28] sm:$0xff] %v584_v50  ;;  %v526_v54 = vadd.f32 %v877_v17, %v525_v53  ;;  %v735_v55 = vpop.f32.mrb[10].mxu1 }
 0x1e6   :  { %v566_v56 = vmax.f32 %v534_v52, 0.0  ;;  %v537_v57 = vadd.f32 %v735_v55, %v877_v17  ;;  %v528_v58 = vpop.f32.mrb[11].mxu1 }
 0x1e7   :  { %v564_v59 = vmax.f32 %v526_v54, 0.0  ;;  %v529_v60 = vadd.f32 %v877_v17, %v528_v58 }
 0x1e8   :  { %v589_v61 = vadd.f32 %v883_v21, %v566_v56  ;;  %v567_v62 = vmax.f32 %v537_v57, 0.0 }
 0x1e9   :  { %v587_v63 = vadd.f32 %v883_v21, %v564_v59  ;;  %v565_v0 = vmax.f32 %v529_v60, 0.0 }
 0x1ea   :  { %605 = vst [vmem:[%s970_s6 + $0x50] sm:$0xff] %v589_v61  ;;  %v590_v1 = vadd.f32 %v883_v21, %v567_v62 }
 0x1eb   :  { %603 = vst [vmem:[%s970_s6 + $0x40] sm:$0xff] %v587_v63  ;;  %v588_v2 = vadd.f32 %v883_v21, %v565_v0  ;;  %v738_v3 = vpop.f32.mrb[12].mxu1 }
 0x1ec   :  { %606 = vst [vmem:[%s970_s6 + $0x58] sm:$0xff] %v590_v1  ;;  %v550_v4 = vadd.f32 %v738_v3, %v877_v17  ;;  %v541_v5 = vpop.f32.mrb[13].mxu1 }
 0x1ed   :  { %604 = vst [vmem:[%s970_s6 + $0x48] sm:$0xff] %v588_v2  ;;  %v542_v6 = vadd.f32 %v877_v17, %v541_v5  ;;  %v739_v7 = vpop.f32.mrb[14].mxu1 }
 0x1ee   :  { %v570_v8 = vmax.f32 %v550_v4, 0.0  ;;  %v553_v9 = vadd.f32 %v739_v7, %v877_v17  ;;  %v544_v10 = vpop.f32.mrb[15].mxu1 }
 0x1ef   :  { %v568_v11 = vmax.f32 %v542_v6, 0.0  ;;  %v545_v12 = vadd.f32 %v877_v17, %v544_v10 }
 0x1f0   :  { %v593_v13 = vadd.f32 %v883_v21, %v570_v8  ;;  %v571_v14 = vmax.f32 %v553_v9, 0.0 }
 0x1f1   :  { %v591_v15 = vadd.f32 %v883_v21, %v568_v11  ;;  %v569_v16 = vmax.f32 %v545_v12, 0.0 }
 0x1f2   :  { %609 = vst [vmem:[%s970_s6 + $0x70] sm:$0xff] %v593_v13  ;;  %v594_v18 = vadd.f32 %v883_v21, %v571_v14 }
 0x1f3   :  { %607 = vst [vmem:[%s970_s6 + $0x60] sm:$0xff] %v591_v15  ;;  %v592_v19 = vadd.f32 %v883_v21, %v569_v16 }
 0x1f4   :  { %610 = vst [vmem:[%s970_s6 + $0x78] sm:$0xff] %v594_v18 }
 0x1f5   :  { %608 = vst [vmem:[%s970_s6 + $0x68] sm:$0xff] %v592_v19 }

// kernel: fwd.7
= control target key start
LH: loop header
LB: loop body
LE: loop exit
PB: predicated region body
PF: predicated region fallthrough
CT: control target
= control target key end

     0   :  { %v38_v0 = vlaneseq  ;;  %v787_v4 = vmov 0.0   ;;  %vm788_vm1 = vmmov 0   ;;  %s1058_s0 = inlined_call_operand.vmem [shape: f32[16,128], index: 0, kind: input, shape index: {}]   ;;  %s1059_s1 = inlined_call_operand.vmem [shape: f32[16,128], index: 1, kind: input, shape index: {}]   ;;  %s1060_s3 = inlined_call_operand.vmem [shape: bf16[128,128], index: 3, kind: input, shape index: {}]   ;;  %s1061_s5 = inlined_call_operand.vmem [shape: bf16[128,128], index: 5, kind: input, shape index: {}]   ;;  %s1062_s2 = inlined_call_operand.vmem [shape: f32[8,128], index: 2, kind: input, shape index: {}]   ;;  %s1063_s4 = inlined_call_operand.vmem [shape: f32[1,128], index: 4, kind: input, shape index: {}]   ;;  %s1064_s6 = inlined_call_operand.vmem [shape: bf16[128,128], index: 6, kind: input, shape index: {}]   ;;  %s1065_s8 = inlined_call_operand.vmem [shape: bf16[128,128], index: 8, kind: input, shape index: {}]   ;;  %s1066_s10 = inlined_call_operand.vmem [shape: f32[16,128], index: 10, kind: output, shape index: {0}]   ;;  %s1067_s7 = inlined_call_operand.vmem [shape: f32[1,128], index: 7, kind: input, shape index: {}]   ;;  %s1068_s9 = inlined_call_operand.vmem [shape: f32[1,128], index: 9, kind: input, shape index: {}]   ;;  %s1069_s11 = inlined_call_operand.vmem [shape: f32[16,128], index: 11, kind: output, shape index: {1}]  }
   0x1   :  { %v44_v1 = vld [vmem:[%s1058_s0] sm:$0xff]  ;;  %v45_v3 = vld [vmem:[%s1058_s0 + $0x8] sm:$0xff]  ;;  %665 = vmatprep.subr.bf16.mxu0 %v787_v4  ;;  %685 = vmatprep.subr.bf16.mxu1 %v787_v4  ;;  %v749_v24 = vld [vmem:[%s1060_s3 + $0x10] sm:$0xff]  }
   0x2   :  { %v46_v2 = vld [vmem:[%s1059_s1] sm:$0xff]  ;;  %v39_v5 = vand.u32 127, %v38_v0  ;;  %v47_v7 = vld [vmem:[%s1059_s1 + $0x8] sm:$0xff]  ;;  %v750_v25 = vld [vmem:[%s1060_s3 + $0x18] sm:$0xff]   ;;  %681 = vmatprep.mubr.msk.bf16.mxu0 %vm788_vm1, %v787_v4  ;;  %701 = vmatprep.mubr.msk.bf16.mxu1 %vm788_vm1, %v787_v4  ;;  %v940_v42 = vshrl.u32 %v38_v0, 7 }
   0x3   :  { %v48_v6 = vadd.f32 %v46_v2, %v44_v1  ;;  %v49_v8 = vadd.f32 %v47_v7, %v45_v3  ;;  %v747_v12 = vld [vmem:[%s1060_s3] sm:$0xff]   ;;  %v748_v23 = vld [vmem:[%s1060_s3 + $0x8] sm:$0xff]   ;;  %v753_v28 = vld [vmem:[%s1060_s3 + $0x30] sm:$0xff]  }
   0x4   :  { %vm40_vm0 = vcmp.lt.s32.totalorder %v39_v5, 32  ;;  %666 = vmatpush3.bf16.msra.mxu0 %v747_v12  ;;  %v751_v26 = vld [vmem:[%s1060_s3 + $0x20] sm:$0xff]   ;;  %v752_v27 = vld [vmem:[%s1060_s3 + $0x28] sm:$0xff]   ;;  %v754_v29 = vld [vmem:[%s1060_s3 + $0x38] sm:$0xff]   ;;  %v78_v43 = vsub.s32 0, %v940_v42  ;;  %v84_v48 = vsub.s32 1, %v940_v42 }
   0x5   :  { %v865_v9 = vsel %vm40_vm0, 1.0, %v787_v4  ;;  %667 = vmatprep.subr.bf16.mxu0 %v787_v4  ;;  %v755_v30 = vld [vmem:[%s1061_s5] sm:$0xff]   ;;  %v756_v31 = vld [vmem:[%s1061_s5 + $0x8] sm:$0xff]   ;;  %v757_v32 = vld [vmem:[%s1061_s5 + $0x10] sm:$0xff]  }
   0x6   :  { %v50_v10 = vmul.f32 %v865_v9, %v48_v6  ;;  %v51_v11 = vmul.f32 %v865_v9, %v49_v8  ;;  %686 = vmatpush3.bf16.msra.mxu1 %v755_v30  ;;  %v758_v33 = vld [vmem:[%s1061_s5 + $0x18] sm:$0xff]   ;;  %v759_v34 = vld [vmem:[%s1061_s5 + $0x20] sm:$0xff]   ;;  %v760_v35 = vld [vmem:[%s1061_s5 + $0x28] sm:$0xff]  }
   0x7   :  { %687 = vmatprep.subr.bf16.mxu1 %v787_v4  ;;  %v946_v44 = vld [vmem:[%s1062_s2] sm:$0xff]  ;;  %v761_v57 = vld [vmem:[%s1061_s5 + $0x30] sm:$0xff]   ;;  %v762_v58 = vld [vmem:[%s1061_s5 + $0x38] sm:$0xff]  }
   0x8   :  { %52 = vadd.xlane.f32.xlu0 %v50_v10  ;;  %668 = vmatpush3.bf16.msra.mxu0 %v748_v23  ;;  %v79_v47 = vrot.slane %v946_v44, %v78_v43  ;;  %v85_v52 = vrot.slane %v946_v44, %v84_v48  ;;  %v594_v59 = vld [vmem:[%s1063_s4] ss:$0 sm:$0xff] }
   0x9   :  { %669 = vmatprep.subr.bf16.mxu0 %v787_v4 }
   0xa   :  { %688 = vmatpush3.bf16.msra.mxu1 %v756_v31  ;;  %v765_v31 = vld [vmem:[%s1064_s6 + $0x10] sm:$0xff]  }
   0xb   :  { %689 = vmatprep.subr.bf16.mxu1 %v787_v4 }
   0xc   :  { %54 = vadd.xlane.f32.xlu0 %v51_v11  ;;  %670 = vmatpush3.bf16.msra.mxu0 %v749_v24 }
   0xd   :  { %671 = vmatprep.subr.bf16.mxu0 %v787_v4 }
   0xe   :  { %690 = vmatpush3.bf16.msra.mxu1 %v757_v32  ;;  %v766_v32 = vld [vmem:[%s1064_s6 + $0x18] sm:$0xff]  }
   0xf   :  { %691 = vmatprep.subr.bf16.mxu1 %v787_v4 }
  0x10   :  { %672 = vmatpush3.bf16.msra.mxu0 %v750_v25 }
  0x11   :  { %673 = vmatprep.subr.bf16.mxu0 %v787_v4 }
  0x12   :  { %692 = vmatpush3.bf16.msra.mxu1 %v758_v33  ;;  %v768_v33 = vld [vmem:[%s1064_s6 + $0x28] sm:$0xff]  }
  0x13   :  { %693 = vmatprep.subr.bf16.mxu1 %v787_v4 }
  0x14   :  { %674 = vmatpush3.bf16.msra.mxu0 %v751_v26 }
  0x15   :  { %675 = vmatprep.subr.bf16.mxu0 %v787_v4 }
  0x16   :  { %694 = vmatpush3.bf16.msra.mxu1 %v759_v34  ;;  %v769_v34 = vld [vmem:[%s1064_s6 + $0x30] sm:$0xff]  }
  0x17   :  { %695 = vmatprep.subr.bf16.mxu1 %v787_v4 }
  0x18   :  { %676 = vmatpush3.bf16.msra.mxu0 %v752_v27 }
  0x19   :  { %677 = vmatprep.subr.bf16.mxu0 %v787_v4 }
  0x1a   :  { %696 = vmatpush3.bf16.msra.mxu1 %v760_v35  ;;  %v770_v35 = vld [vmem:[%s1064_s6 + $0x38] sm:$0xff]  }
  0x1b   :  { %697 = vmatprep.subr.bf16.mxu1 %v787_v4 }
  0x1c   :  { %678 = vmatpush3.bf16.msra.mxu0 %v753_v28 }
  0x1d   :  { %679 = vmatprep.subr.bf16.mxu0 %v787_v4 }
  0x1e   :  { %698 = vmatpush3.bf16.msra.mxu1 %v761_v57 }
  0x1f   :  { %699 = vmatprep.subr.bf16.mxu1 %v787_v4 }
  0x20   :  { %680 = vmatpush3.bf16.msra.mxu0 %v754_v29 }
  0x21   :  { %705 = vmatprep.subr.bf16.mxu0 %v787_v4 }
  0x22   :  { %700 = vmatpush3.bf16.msra.mxu1 %v762_v58 }
  0x23   :  { %725 = vmatprep.subr.bf16.mxu1 %v787_v4 }
  0x95   :  { %v53_v13 = vpop.xlane.xlu0 %52 }
  0x96   :  { %v56_v14 = vmul.f32 0.03125, %v53_v13 }
  0x98   :  { %v58_v15 = vsub.f32 %v48_v6, %v56_v14  ;;  %v222_v6 = vsub.s32 4, %v940_v42 }
  0x99   :  { %v55_v16 = vpop.xlane.xlu0 %54 }
  0x9a   :  { %v57_v17 = vmul.f32 0.03125, %v55_v16  ;;  %v874_v18 = vmul.f32 %v865_v9, %v58_v15  ;;  %v223_v7 = vrot.slane %v946_v44, %v222_v6 }
  0x9c   :  { %v59_v19 = vsub.f32 %v49_v8, %v57_v17  ;;  %v62_v20 = vmul.f32 %v874_v18, %v874_v18 }
  0x9e   :  { %64 = vadd.xlane.f32.xlu1 %v62_v20  ;;  %v879_v21 = vmul.f32 %v865_v9, %v59_v19  ;;  %v763_v19 = vld [vmem:[%s1064_s6] sm:$0xff]   ;;  %v764_v20 = vld [vmem:[%s1064_s6 + $0x8] sm:$0xff]  }
  0xa0   :  { %v63_v22 = vmul.f32 %v879_v21, %v879_v21 }
  0xa2   :  { %66 = vadd.xlane.f32.xlu1 %v63_v22 }
 0x12b   :  { %v65_v36 = vpop.xlane.xlu1 %64 }
 0x12c   :  { %v68_v37 = vmul.f32 0.03125, %v65_v36  ;;  %v771_v36 = vld [vmem:[%s1065_s8] sm:$0xff]  }
 0x12e   :  { %v70_v38 = vadd.f32 1e-05, %v68_v37  ;;  %v772_v37 = vld [vmem:[%s1065_s8 + $0x8] sm:$0xff]  }
 0x12f   :  { %v67_v39 = vpop.xlane.xlu1 %66 }
 0x130   :  { %779 = vrsqrt.f32 %v70_v38  ;;  %v69_v40 = vmul.f32 0.03125, %v67_v39  ;;  %v773_v38 = vld [vmem:[%s1065_s8 + $0x10] sm:$0xff]   ;;  %v774_v39 = vld [vmem:[%s1065_s8 + $0x18] sm:$0xff]  }
 0x132   :  { %v71_v41 = vadd.f32 1e-05, %v69_v40  ;;  %v775_v40 = vld [vmem:[%s1065_s8 + $0x20] sm:$0xff]  }
 0x134   :  { %781 = vrsqrt.f32 %v71_v41  ;;  %v776_v41 = vld [vmem:[%s1065_s8 + $0x28] sm:$0xff]  }
 0x13a   :  { %v780_v45 = vpop.eup %779 }
 0x13b   :  { %v74_v46 = vmul.f32 %v780_v45, %v874_v18 }
 0x13d   :  { %v80_v51 = vmul.f32 %v79_v47, %v74_v46 }
 0x13e   :  { %v782_v49 = vpop.eup %781 }
 0x13f   :  { %v75_v50 = vmul.f32 %v782_v49, %v879_v21  ;;  %v86_v54 = vadd.f32 %v85_v52, %v80_v51  ;;  %v349_v51 = vsub.s32 3, %v940_v42 }
 0x141   :  { %v81_v53 = vmul.f32 %v79_v47, %v75_v50  ;;  %v343_v50 = vsub.s32 2, %v940_v42 }
 0x143   :  { %v87_v55 = vadd.f32 %v85_v52, %v81_v53  ;;  %v344_v52 = vrot.slane %v946_v44, %v343_v50 }
 0x145   :  { %v88_v56 = vpack.c.bf16 %v87_v55, %v86_v54 }
 0x147   :  { %682 = vmatmul.mubr.bf16.vlgmr.msra.gmra.mrb[0].mxu0 %v88_v56 }
 0x148   :  { %721 = vmatprep.mubr.msk.bf16.mxu0 %vm788_vm1, %v787_v4  ;;  %706 = vmatpush3.bf16.msra.mxu0 %v763_v19 }
 0x149   :  { %707 = vmatprep.subr.bf16.mxu0 %v787_v4 }
 0x14c   :  { %708 = vmatpush3.bf16.msra.mxu0 %v764_v20 }
 0x14d   :  { %709 = vmatprep.subr.bf16.mxu0 %v787_v4 }
 0x150   :  { %710 = vmatpush3.bf16.msra.mxu0 %v765_v31 }
 0x151   :  { %711 = vmatprep.subr.bf16.mxu0 %v787_v4 }
 0x154   :  { %712 = vmatpush3.bf16.msra.mxu0 %v766_v32 }
 0x155   :  { %713 = vmatprep.subr.bf16.mxu0 %v787_v4 }
 0x21a   :  { %v194_v60 = vpop.f32.mrb[0].mxu0 }
 0x21b   :  { %v195_v61 = vadd.f32 %v594_v59, %v194_v60  ;;  %v683_v62 = vpop.f32.mrb[1].mxu0 }
 0x21c   :  { %v197_v63 = vpop.f32.mrb[2].mxu0  ;;  %v778_v62 = vld [vmem:[%s1065_s8 + $0x38] sm:$0xff]  }
 0x21d   :  { %v198_v0 = vadd.f32 %v594_v59, %v197_v63  ;;  %v684_v1 = vpop.f32.mrb[3].mxu0  ;;  %v201_v2 = vmax.f32 %v195_v61, 0.0  ;;  %v611_v63 = vld [vmem:[%s1067_s7] ss:$0 sm:$0xff] }
 0x21f   :  { %v202_v3 = vmax.f32 %v198_v0, 0.0 }
 0x221   :  { %v203_v5 = vpack.c.bf16 %v202_v3, %v201_v2 }
 0x223   :  { %702 = vmatmul.mubr.bf16.vlgmr.msra.gmra.mrb[0].mxu1 %v203_v5 }
 0x224   :  { %741 = vmatprep.mubr.msk.bf16.mxu1 %vm788_vm1, %v787_v4  ;;  %726 = vmatpush3.bf16.msra.mxu1 %v771_v36 }
 0x225   :  { %727 = vmatprep.subr.bf16.mxu1 %v787_v4 }
 0x228   :  { %728 = vmatpush3.bf16.msra.mxu1 %v772_v37 }
 0x229   :  { %729 = vmatprep.subr.bf16.mxu1 %v787_v4 }
 0x22c   :  { %730 = vmatpush3.bf16.msra.mxu1 %v773_v38 }
 0x22d   :  { %731 = vmatprep.subr.bf16.mxu1 %v787_v4 }
 0x230   :  { %732 = vmatpush3.bf16.msra.mxu1 %v774_v39 }
 0x231   :  { %733 = vmatprep.subr.bf16.mxu1 %v787_v4 }
 0x234   :  { %734 = vmatpush3.bf16.msra.mxu1 %v775_v40 }
 0x235   :  { %735 = vmatprep.subr.bf16.mxu1 %v787_v4 }
 0x238   :  { %736 = vmatpush3.bf16.msra.mxu1 %v776_v41 }
 0x239   :  { %737 = vmatprep.subr.bf16.mxu1 %v787_v4 }
 0x2f6   :  { %v306_v8 = vpop.f32.mrb[0].mxu1 }
 0x2f7   :  { %v307_v10 = vadd.f32 %v306_v8, %v223_v7  ;;  %v703_v11 = vpop.f32.mrb[1].mxu1 }
 0x2f8   :  { %v309_v12 = vpop.f32.mrb[2].mxu1 }
 0x2f9   :  { %v313_v13 = vadd.f32 %v307_v10, %v86_v54  ;;  %v310_v14 = vadd.f32 %v309_v12, %v223_v7  ;;  %v704_v15 = vpop.f32.mrb[3].mxu1 }
 0x2fb   :  { %v314_v16 = vadd.f32 %v310_v14, %v87_v55  ;;  %v315_v17 = vmul.f32 %v865_v9, %v313_v13  ;;  %v350_v55 = vrot.slane %v946_v44, %v349_v51  ;;  %v777_v44 = vld [vmem:[%s1065_s8 + $0x30] sm:$0xff]  }
 0x2fc   :  { %738 = vmatpush3.bf16.msra.mxu1 %v777_v44 }
 0x2fd   :  { %317 = vadd.xlane.f32.xlu0 %v315_v17  ;;  %v316_v18 = vmul.f32 %v865_v9, %v314_v16  ;;  %739 = vmatprep.subr.bf16.mxu1 %v787_v4 }
 0x2ff   :  { %319 = vadd.xlane.f32.xlu1 %v316_v18 }
 0x300   :  { %740 = vmatpush3.bf16.msra.mxu1 %v778_v62 }
 0x38a   :  { %v318_v21 = vpop.xlane.xlu0 %317 }
 0x38b   :  { %v321_v22 = vmul.f32 0.03125, %v318_v21 }
 0x38c   :  { %v320_v23 = vpop.xlane.xlu1 %319 }
 0x38d   :  { %v323_v24 = vsub.f32 %v313_v13, %v321_v22  ;;  %v322_v25 = vmul.f32 0.03125, %v320_v23 }
 0x38f   :  { %v324_v26 = vsub.f32 %v314_v16, %v322_v25  ;;  %v325_v27 = vmul.f32 %v865_v9, %v323_v24 }
 0x391   :  { %v327_v28 = vmul.f32 %v325_v27, %v325_v27  ;;  %v326_v29 = vmul.f32 %v865_v9, %v324_v26  ;;  %v767_v9 = vld [vmem:[%s1064_s6 + $0x20] sm:$0xff]  }
 0x392   :  { %714 = vmatpush3.bf16.msra.mxu0 %v767_v9 }
 0x393   :  { %329 = vadd.xlane.f32.xlu0 %v327_v28  ;;  %v328_v30 = vmul.f32 %v326_v29, %v326_v29  ;;  %715 = vmatprep.subr.bf16.mxu0 %v787_v4 }
 0x395   :  { %331 = vadd.xlane.f32.xlu1 %v328_v30 }
 0x396   :  { %716 = vmatpush3.bf16.msra.mxu0 %v768_v33 }
 0x397   :  { %717 = vmatprep.subr.bf16.mxu0 %v787_v4 }
 0x39a   :  { %718 = vmatpush3.bf16.msra.mxu0 %v769_v34 }
 0x39b   :  { %719 = vmatprep.subr.bf16.mxu0 %v787_v4  ;;  %v620_v4 = vld [vmem:[%s1068_s9] ss:$0 sm:$0xff] }
 0x39e   :  { %720 = vmatpush3.bf16.msra.mxu0 %v770_v35 }
 0x420   :  { %v330_v43 = vpop.xlane.xlu0 %329 }
 0x421   :  { %v333_v45 = vmul.f32 0.03125, %v330_v43 }
 0x422   :  { %v332_v46 = vpop.xlane.xlu1 %331 }
 0x423   :  { %v335_v47 = vadd.f32 1e-05, %v333_v45  ;;  %v334_v48 = vmul.f32 0.03125, %v332_v46 }
 0x425   :  { %783 = vrsqrt.f32 %v335_v47  ;;  %v336_v49 = vadd.f32 1e-05, %v334_v48 }
 0x427   :  { %785 = vrsqrt.f32 %v336_v49 }
 0x42f   :  { %v784_v53 = vpop.eup %783 }
 0x430   :  { %v339_v54 = vmul.f32 %v784_v53, %v325_v27 }
 0x431   :  { %v786_v56 = vpop.eup %785 }
 0x432   :  { %v340_v57 = vmul.f32 %v786_v56, %v326_v29  ;;  %v345_v58 = vmul.f32 %v344_v52, %v339_v54 }
 0x434   :  { %v346_v59 = vmul.f32 %v344_v52, %v340_v57  ;;  %v351_v60 = vadd.f32 %v350_v55, %v345_v58 }
 0x436   :  { %v352_v61 = vadd.f32 %v350_v55, %v346_v59  ;;  %353 = vst [vmem:[%s1066_s10] sm:$0xff] %v351_v60 }
 0x438   :  { %354 = vst [vmem:[%s1066_s10 + $0x8] sm:$0xff] %v352_v61  ;;  %v355_v42 = vpack.c.bf16 %v352_v61, %v351_v60 }
 0x43a   :  { %722 = vmatmul.mubr.bf16.vlgmr.msra.gmra.mrb[4].mxu0 %v355_v42 }
 0x50d   :  { %v461_v0 = vpop.f32.mrb[4].mxu0 }
 0x50e   :  { %v462_v1 = vadd.f32 %v611_v63, %v461_v0  ;;  %v723_v2 = vpop.f32.mrb[5].mxu0 }
 0x50f   :  { %v464_v3 = vpop.f32.mrb[6].mxu0 }
 0x510   :  { %v465_v5 = vadd.f32 %v611_v63, %v464_v3  ;;  %v724_v6 = vpop.f32.mrb[7].mxu0  ;;  %v468_v7 = vmax.f32 %v462_v1, 0.0 }
 0x512   :  { %v469_v8 = vmax.f32 %v465_v5, 0.0 }
 0x514   :  { %v470_v10 = vpack.c.bf16 %v469_v8, %v468_v7 }
 0x516   :  { %742 = vmatmul.mubr.bf16.vlgmr.msra.gmra.mrb[4].mxu1 %v470_v10 }
 0x5e9   :  { %v576_v11 = vpop.f32.mrb[4].mxu1 }
 0x5ea   :  { %v577_v12 = vadd.f32 %v620_v4, %v576_v11  ;;  %v743_v13 = vpop.f32.mrb[5].mxu1 }
 0x5eb   :  { %v579_v14 = vpop.f32.mrb[6].mxu1 }
 0x5ec   :  { %583 = vst [vmem:[%s1069_s11] sm:$0xff] %v577_v12  ;;  %v580_v15 = vadd.f32 %v620_v4, %v579_v14  ;;  %v744_v16 = vpop.f32.mrb[7].mxu1 }
 0x5ee   :  { %584 = vst [vmem:[%s1069_s11 + $0x8] sm:$0xff] %v580_v15 }

</bundles_post_ra>
